<compile_context>
chip_gen: v7x
topology: tpu7x:2x2x1
jax: 0.10.0
libtpu: 0.0.40
codegen_flags: <defaults>
</compile_context>

<pallas_src>
import functools
import math

import jax
import jax.numpy as jnp
from jax.experimental import pallas as pl
from jax.experimental.pallas import tpu as pltpu


_SQRT2_INV = 1.0 / math.sqrt(2.0)


def _compute_vmem_limit():
    """~75% of physical per-core VMEM; falls back to a conservative 48 MiB."""
    try:
        info = pltpu.get_tpu_info()
        cap = getattr(info, "vmem_capacity_bytes", None)
        if cap:
            return int(cap) * 3 // 4
    except Exception:
        pass
    return 48 * 1024 * 1024


VMEM_LIMIT_BYTES = _compute_vmem_limit()


# ----------------------------------------------------------------------------
# tiling helpers
# ----------------------------------------------------------------------------
def _round_up(x, m):
    return (x + m - 1) // m * m


def _pick_row_tile(m, target=256):
    """Row (sublane) tile.  Prefer a tile that divides M exactly (no pad);
    for large M prefer multiples of 16 (bf16-native sublane packing)."""
    if m <= target:
        tm = max(8, _round_up(m, 8))
        return tm, tm                      # single tile == full (padded) dim
    for tm in range(target, 15, -16):      # exact divisor -> no pad round trip
        if m % tm == 0:
            return tm, m
    return target, _round_up(m, target)


def _pick_lane_tile(n, k, target=512):
    """Lane (output-N) tile for a (K, N) weight.  Full N when the bf16 weight
    slab is small enough to keep resident; otherwise prefer 256-multiples
    (2x256 MXU on v6e/v7x), then 128-multiples."""
    if n <= target or (k * n * 2) <= 8 * 1024 * 1024:
        return n
    for step in (256, 128):
        t = (target // step) * step
        while t >= step:
            if n % t == 0:
                return t
            t -= step
    return n


def _cparams(grid_rank):
    return pltpu.CompilerParams(
        dimension_semantics=("parallel",) * grid_rank,
        vmem_limit_bytes=VMEM_LIMIT_BYTES)


def _gelu(y):
    # BERT uses the exact (erf) GELU; keep it for semantic fidelity.
    return 0.5 * y * (1.0 + jax.lax.erf(y * _SQRT2_INV))


# ----------------------------------------------------------------------------
# Pallas kernels
# ----------------------------------------------------------------------------
def _linear_kernel(x_ref, w_ref, b_ref, o_ref, *, activation):
    # x bf16, w bf16, bias f32; f32 accumulation; bf16 output.
    y = jnp.dot(x_ref[...], w_ref[...], preferred_element_type=jnp.float32)
    y = y + b_ref[...].astype(jnp.float32)
    if activation == "gelu":
        y = _gelu(y)
    o_ref[...] = y.astype(o_ref.dtype)


def linear(x, w, b, activation=None, tm_target=256, tn_target=512):
    """y = act(x @ w + b).  x: (M, K) bf16, w: (K, N) bf16, b: (N,) f32.
    Returns bf16 (M, N)."""
    M, K = x.shape
    N = w.shape[1]
    tm, Mp = _pick_row_tile(M, tm_target)
    tn = _pick_lane_tile(N, K, tn_target)
    xp = jnp.pad(x, ((0, Mp - M), (0, 0))) if Mp != M else x
    out = pl.pallas_call(
        functools.partial(_linear_kernel, activation=activation),
        grid=(Mp // tm, N // tn),
        out_shape=jax.ShapeDtypeStruct((Mp, N), jnp.bfloat16),
        in_specs=[
            pl.BlockSpec((tm, K), lambda i, j: (i, 0)),
            pl.BlockSpec((K, tn), lambda i, j: (0, j)),
            pl.BlockSpec((1, tn), lambda i, j: (0, j)),
        ],
        out_specs=pl.BlockSpec((tm, tn), lambda i, j: (i, j)),
        compiler_params=_cparams(2),
    )(xp, w, b.reshape(1, N))
    return out[:M] if Mp != M else out


def _linear_add_ln_kernel(x_ref, w_ref, b_ref, r_ref, g_ref, bb_ref, o_ref, *, eps):
    # fused:  LayerNorm( x @ w + b + residual ), all epilogue math in f32.
    y = jnp.dot(x_ref[...], w_ref[...], preferred_element_type=jnp.float32)
    y = y + b_ref[...].astype(jnp.float32) + r_ref[...].astype(jnp.float32)
    mu = jnp.mean(y, axis=-1, keepdims=True)
    var = jnp.mean(jnp.square(y - mu), axis=-1, keepdims=True)
    yn = (y - mu) * jax.lax.rsqrt(var + eps)
    o_ref[...] = (yn * g_ref[...].astype(jnp.float32)
                  + bb_ref[...].astype(jnp.float32)).astype(o_ref.dtype)


def linear_add_layernorm(x, w, b, residual, gamma, beta, eps=1e-12, tm_target=256):
    """LayerNorm(x @ w + b + residual).  x: (M, K) bf16, w: (K, H) bf16,
    residual: (M, H) bf16.  Returns bf16 (M, H)."""
    M, K = x.shape
    H = w.shape[1]
    tm, Mp = _pick_row_tile(M, tm_target)
    if Mp != M:
        x = jnp.pad(x, ((0, Mp - M), (0, 0)))
        residual = jnp.pad(residual, ((0, Mp - M), (0, 0)))
    out = pl.pallas_call(
        functools.partial(_linear_add_ln_kernel, eps=eps),
        grid=(Mp // tm,),
        out_shape=jax.ShapeDtypeStruct((Mp, H), jnp.bfloat16),
        in_specs=[
            pl.BlockSpec((tm, K), lambda i: (i, 0)),
            pl.BlockSpec((K, H), lambda i: (0, 0)),
            pl.BlockSpec((1, H), lambda i: (0, 0)),
            pl.BlockSpec((tm, H), lambda i: (i, 0)),
            pl.BlockSpec((1, H), lambda i: (0, 0)),
            pl.BlockSpec((1, H), lambda i: (0, 0)),
        ],
        out_specs=pl.BlockSpec((tm, H), lambda i: (i, 0)),
        compiler_params=_cparams(1),
    )(x, w, b.reshape(1, H), residual, gamma.reshape(1, H), beta.reshape(1, H))
    return out[:M] if Mp != M else out


def _attn_core(xq, xkv, wq, wk, wv, bq, bk, bv, mask, scale):
    """Single-head attention with fused Q/K/V projection.
    xq: (Sq, H) bf16; xkv: (Skv, H) bf16; w*: (H, dh) bf16; b*: (1, dh) f32;
    mask: (1, Skv) f32 additive.  Returns (Sq, dh) f32 context."""
    q = (jnp.dot(xq, wq, preferred_element_type=jnp.float32) + bq) * scale
    k = jnp.dot(xkv, wk, preferred_element_type=jnp.float32) + bk
    v = jnp.dot(xkv, wv, preferred_element_type=jnp.float32) + bv
    s = jax.lax.dot_general(q.astype(jnp.bfloat16), k.astype(jnp.bfloat16),
                            (((1,), (1,)), ((), ())),
                            preferred_element_type=jnp.float32)      # (Sq, Skv)
    s = s + mask
    s = s - jnp.max(s, axis=-1, keepdims=True)
    p = jnp.exp(s)
    p = p * pl.reciprocal(jnp.sum(p, axis=-1, keepdims=True), approx=True)
    return jnp.dot(p.astype(jnp.bfloat16), v.astype(jnp.bfloat16),
                   preferred_element_type=jnp.float32)


def _self_attn_kernel(x_ref, wq_ref, wk_ref, wv_ref, bq_ref, bk_ref, bv_ref,
                      m_ref, o_ref, *, scale):
    x = x_ref[0]                                                      # (S, H) bf16
    ctx = _attn_core(x, x, wq_ref[0], wk_ref[0], wv_ref[0],
                     bq_ref[0].astype(jnp.float32),
                     bk_ref[0].astype(jnp.float32),
                     bv_ref[0].astype(jnp.float32),
                     m_ref[0].astype(jnp.float32), scale)
    o_ref[...] = ctx[None, None].astype(o_ref.dtype)                  # (1,1,S,dh)


def _cross_attn_kernel(xq_ref, xkv_ref, wq_ref, wk_ref, wv_ref,
                       bq_ref, bk_ref, bv_ref, m_ref, o_ref, *, scale):
    ctx = _attn_core(xq_ref[0], xkv_ref[0], wq_ref[0], wk_ref[0], wv_ref[0],
                     bq_ref[0].astype(jnp.float32),
                     bk_ref[0].astype(jnp.float32),
                     bv_ref[0].astype(jnp.float32),
                     m_ref[0].astype(jnp.float32), scale)
    o_ref[...] = ctx[None, None].astype(o_ref.dtype)


def fused_self_attention(x, wq, wk, wv, bq, bk, bv, add_mask, num_heads):
    """x: (B, S, H) bf16; wq/wk/wv: (nh, H, dh) bf16; b*: (nh, 1, dh) f32;
    add_mask: (B, 1, S) f32 additive.  Returns head-major (B, nh, S, dh) bf16."""
    B, S, H = x.shape
    dh = H // num_heads
    head_spec = pl.BlockSpec((1, H, dh), lambda b, h: (h, 0, 0))
    bias_spec = pl.BlockSpec((1, 1, dh), lambda b, h: (h, 0, 0))
    return pl.pallas_call(
        functools.partial(_self_attn_kernel, scale=1.0 / math.sqrt(dh)),
        grid=(B, num_heads),
        out_shape=jax.ShapeDtypeStruct((B, num_heads, S, dh), jnp.bfloat16),
        in_specs=[
            pl.BlockSpec((1, S, H), lambda b, h: (b, 0, 0)),
            head_spec, head_spec, head_spec,
            bias_spec, bias_spec, bias_spec,
            pl.BlockSpec((1, 1, S), lambda b, h: (b, 0, 0)),
        ],
        out_specs=pl.BlockSpec((1, 1, S, dh), lambda b, h: (b, h, 0, 0)),
        compiler_params=_cparams(2),
    )(x, wq, wk, wv, bq, bk, bv, add_mask)


def fused_cross_attention(xq, xkv, wq, wk, wv, bq, bk, bv, add_mask, num_heads):
    """xq: (B, Sq, H) bf16 queries source; xkv: (B, Skv, H) bf16 key/value source;
    add_mask: (B, 1, Skv) f32 additive.  Returns head-major (B, nh, Sq, dh) bf16."""
    B, Sq, H = xq.shape
    Skv = xkv.shape[1]
    dh = H // num_heads
    head_spec = pl.BlockSpec((1, H, dh), lambda b, h: (h, 0, 0))
    bias_spec = pl.BlockSpec((1, 1, dh), lambda b, h: (h, 0, 0))
    return pl.pallas_call(
        functools.partial(_cross_attn_kernel, scale=1.0 / math.sqrt(dh)),
        grid=(B, num_heads),
        out_shape=jax.ShapeDtypeStruct((B, num_heads, Sq, dh), jnp.bfloat16),
        in_specs=[
            pl.BlockSpec((1, Sq, H), lambda b, h: (b, 0, 0)),
            pl.BlockSpec((1, Skv, H), lambda b, h: (b, 0, 0)),
            head_spec, head_spec, head_spec,
            bias_spec, bias_spec, bias_spec,
            pl.BlockSpec((1, 1, Skv), lambda b, h: (b, 0, 0)),
        ],
        out_specs=pl.BlockSpec((1, 1, Sq, dh), lambda b, h: (b, h, 0, 0)),
        compiler_params=_cparams(2),
    )(xq, xkv, wq, wk, wv, bq, bk, bv, add_mask)


# ----------------------------------------------------------------------------
# Model glue (reshapes / parameter plumbing in plain JAX)
# ----------------------------------------------------------------------------
def _merge_heads(ctx):
    """(B, nh, S, dh) head-major -> (B*S, nh*dh) lane-dense."""
    B, nh, S, dh = ctx.shape
    return jnp.transpose(ctx, (0, 2, 1, 3)).reshape(B * S, nh * dh)


def self_attention_block(x, add_mask, p, num_heads):
    """BertAttention (self): fused qkv-proj+MHA kernel -> fused o-proj+res+LN."""
    B, S, H = x.shape
    ctx = fused_self_attention(x, p["q_w"], p["k_w"], p["v_w"],
                               p["q_b"], p["k_b"], p["v_b"], add_mask, num_heads)
    out = linear_add_layernorm(_merge_heads(ctx), p["o_w"], p["o_b"],
                               x.reshape(B * S, H), p["ln_g"], p["ln_b"])
    return out.reshape(B, S, H)


def cross_attention_block(x, mem, add_mask, p, num_heads):
    """BertAttention (cross to working memory)."""
    B, S, H = x.shape
    ctx = fused_cross_attention(x, mem, p["q_w"], p["k_w"], p["v_w"],
                                p["q_b"], p["k_b"], p["v_b"], add_mask, num_heads)
    out = linear_add_layernorm(_merge_heads(ctx), p["o_w"], p["o_b"],
                               x.reshape(B * S, H), p["ln_g"], p["ln_b"])
    return out.reshape(B, S, H)


def memoria_bert_layer(hidden_states, attn_mask, lp, num_heads,
                       working_memory_states=None, working_memory_mask=None):
    attention_output = self_attention_block(hidden_states, attn_mask,
                                            lp["attn"], num_heads)
    if working_memory_states is not None and "mem_attn" in lp:
        # cross-attention: queries = attention_output, keys/values = working memory
        attention_output = cross_attention_block(attention_output,
                                                 working_memory_states,
                                                 working_memory_mask,
                                                 lp["mem_attn"], num_heads)
    # TODO(synk): the second memory-attention pass over Memoria.remind() LTMs is
    # omitted (stateful Memoria store has no Pallas equivalent).

    B, S, H = attention_output.shape
    a2 = attention_output.reshape(B * S, H)
    inter = linear(a2, lp["ffn_wi"], lp["ffn_bi"], activation="gelu")  # BertIntermediate
    out = linear_add_layernorm(inter, lp["ffn_wo"], lp["ffn_bo"],      # MemoriaBertOutput
                               a2, lp["ffn_ln_g"], lp["ffn_ln_b"])
    return out.reshape(B, S, H)


def abstractor_forward(hidden_states, p):
    """Abstractor: learned query slots single-head cross-attend to the sequence,
    followed by a feed-forward (structure mirrors the reference Abstractor)."""
    B, S, H = hidden_states.shape
    Mm = p["queries"].shape[1]
    queries = jnp.broadcast_to(p["queries"], (B, Mm, H)).astype(jnp.bfloat16)
    zero_mask = jnp.zeros((B, 1, S), jnp.float32)
    ctx = fused_cross_attention(queries, hidden_states,
                                p["q_w"], p["k_w"], p["v_w"],
                                p["q_b"], p["k_b"], p["v_b"], zero_mask, 1)
    ctx = _merge_heads(ctx)                                     # (B*Mm, H)
    ctx = linear(ctx, p["o_w"], p["o_b"])
    h = linear(ctx, p["ff_w1"], p["ff_b1"], activation="gelu")
    h = linear(h, p["ff_w2"], p["ff_b2"])
    return h.reshape(B, Mm, H)


def get_extended_attention_mask(mask_2d):
    """HF-style additive mask, stored as (B, 1, S) for the attention kernels."""
    ext = mask_2d[:, None, :].astype(jnp.float32)
    return (1.0 - ext) * jnp.finfo(jnp.float32).min


def memoria_bert_encoder(hidden_states, attention_mask, params, config):
    ext_mask = get_extended_attention_mask(attention_mask)
    hidden_states = hidden_states.astype(jnp.bfloat16)          # bf16 activations
    working_memory_states = None
    working_memory_mask = None
    B = hidden_states.shape[0]

    for i, lp in enumerate(params["layers"]):
        hidden_states = memoria_bert_layer(
            hidden_states, ext_mask, lp, config["num_heads"],
            working_memory_states=working_memory_states,
            working_memory_mask=working_memory_mask,
        )
        if i == config["memory_layer_index"]:
            working_memory_states = abstractor_forward(hidden_states,
                                                       params["abstractor"])
            # all-ones working-memory mask -> additive zeros
            working_memory_mask = jnp.zeros(
                (B, 1, working_memory_states.shape[1]), jnp.float32)
            # TODO(synk): Memoria.add_working_memory / remind /
            # adjust_lifespan_and_memories skipped (stateful host-side store).
    return hidden_states.astype(jnp.float32)


# ----------------------------------------------------------------------------
# Deterministic parameter init.
# Attention Q/K/V weights stored head-major (nh, H, dh) bf16; o / FFN weights
# (in, out) bf16; biases / LN params f32.
# ----------------------------------------------------------------------------
def _init_linear(key, fan_in, fan_out):
    w = (jax.random.normal(key, (fan_in, fan_out), jnp.float32) * 0.02
         ).astype(jnp.bfloat16)
    b = jnp.zeros((fan_out,), jnp.float32)
    return w, b


def _split_heads_w(w, nh):
    h_in, h_out = w.shape
    dh = h_out // nh
    return jnp.transpose(w.reshape(h_in, nh, dh), (1, 0, 2))    # (nh, H, dh)


def _split_heads_b(b, nh):
    dh = b.shape[0] // nh
    return b.reshape(nh, 1, dh)                                  # (nh, 1, dh)


def _init_attention(keys, hidden, nh):
    qw, qb = _init_linear(keys[0], hidden, hidden)
    kw, kb = _init_linear(keys[1], hidden, hidden)
    vw, vb = _init_linear(keys[2], hidden, hidden)
    ow, ob = _init_linear(keys[3], hidden, hidden)
    return dict(q_w=_split_heads_w(qw, nh), q_b=_split_heads_b(qb, nh),
                k_w=_split_heads_w(kw, nh), k_b=_split_heads_b(kb, nh),
                v_w=_split_heads_w(vw, nh), v_b=_split_heads_b(vb, nh),
                o_w=ow, o_b=ob,
                ln_g=jnp.ones((hidden,), jnp.float32),
                ln_b=jnp.zeros((hidden,), jnp.float32))


def init_params(key, num_layers, hidden, intermediate, num_heads, num_memories,
                memory_layer_index):
    keys = jax.random.split(key, num_layers + 1)
    layers = []
    for i in range(num_layers):
        lk = jax.random.split(keys[i], 10)
        lp = dict(attn=_init_attention(lk[0:4], hidden, num_heads))
        if i > memory_layer_index:                   # use_memory_attention
            lp["mem_attn"] = _init_attention(lk[4:8], hidden, num_heads)
        wi, bi = _init_linear(lk[8], hidden, intermediate)
        wo, bo = _init_linear(lk[9], intermediate, hidden)
        lp.update(ffn_wi=wi, ffn_bi=bi, ffn_wo=wo, ffn_bo=bo,
                  ffn_ln_g=jnp.ones((hidden,), jnp.float32),
                  ffn_ln_b=jnp.zeros((hidden,), jnp.float32))
        layers.append(lp)

    ak = jax.random.split(keys[-1], 8)
    aq_w, aq_b = _init_linear(ak[0], hidden, hidden)
    ak_w, ak_b = _init_linear(ak[1], hidden, hidden)
    av_w, av_b = _init_linear(ak[2], hidden, hidden)
    ao_w, ao_b = _init_linear(ak[3], hidden, hidden)
    f1_w, f1_b = _init_linear(ak[4], hidden, intermediate)
    f2_w, f2_b = _init_linear(ak[5], intermediate, hidden)
    abstractor = dict(
        queries=jax.random.normal(ak[6], (1, num_memories, hidden), jnp.float32),
        q_w=_split_heads_w(aq_w, 1), q_b=_split_heads_b(aq_b, 1),
        k_w=_split_heads_w(ak_w, 1), k_b=_split_heads_b(ak_b, 1),
        v_w=_split_heads_w(av_w, 1), v_b=_split_heads_b(av_b, 1),
        o_w=ao_w, o_b=ao_b,
        ff_w1=f1_w, ff_b1=f1_b, ff_w2=f2_w, ff_b2=f2_b,
    )
    return dict(layers=layers, abstractor=abstractor)


# ----------------------------------------------------------------------------
if __name__ == "__main__":
    # Small synthetic config: batch=2, seq=8, hidden=32, heads=2, inter=64,
    # 3 layers, memory_layer_index=0, 4 memory slots.
    B, S, H, I, NH, L = 2, 8, 32, 64, 2, 3
    config = dict(num_heads=NH, memory_layer_index=0, num_memories=4)

    root = jax.random.PRNGKey(0)
    kx, kp = jax.random.split(root)
    hidden_states = jax.random.normal(kx, (B, S, H), jnp.float32)
    attention_mask = jnp.ones((B, S), jnp.float32)
    params = init_params(kp, L, H, I, NH, config["num_memories"],
                         config["memory_layer_index"])

    fwd = jax.jit(lambda x, m: memoria_bert_encoder(x, m, params, config))
    out = fwd(hidden_states, attention_mask)
    jax.block_until_ready(out)

    assert out.shape == (B, S, H)
    assert jnp.all(jnp.isfinite(out))
    print("KERNEL_OK")
</pallas_src>

<mosaic_0001>
module attributes {stable_mosaic.version = 11 : i64} {
  func.func @_self_attn_kernel(%arg0: i32, %arg1: i32, %arg2: memref<1x8x32xbf16, #tpu.memory_space<vmem>>, %arg3: memref<1x32x16xbf16, #tpu.memory_space<vmem>>, %arg4: memref<1x32x16xbf16, #tpu.memory_space<vmem>>, %arg5: memref<1x32x16xbf16, #tpu.memory_space<vmem>>, %arg6: memref<1x1x16xf32, #tpu.memory_space<vmem>>, %arg7: memref<1x1x16xf32, #tpu.memory_space<vmem>>, %arg8: memref<1x1x16xf32, #tpu.memory_space<vmem>>, %arg9: memref<1x1x8xf32, #tpu.memory_space<vmem>>, %arg10: memref<1x1x8x16xbf16, #tpu.memory_space<vmem>>) attributes {dimension_semantics = [#tpu.dimension_semantics<parallel>, #tpu.dimension_semantics<parallel>], iteration_bounds = array<i64: 2, 2>, scalar_prefetch = 0 : i64, scratch_operands = 0 : i64, tpu.core_type = #tpu.core_type<tc>, window_params = [{transform_indices = @transform_0, window_bounds = array<i64: 1, 8, 32>}, {transform_indices = @transform_1, window_bounds = array<i64: 1, 32, 16>}, {transform_indices = @transform_2, window_bounds = array<i64: 1, 32, 16>}, {transform_indices = @transform_3, window_bounds = array<i64: 1, 32, 16>}, {transform_indices = @transform_4, window_bounds = array<i64: 1, 1, 16>}, {transform_indices = @transform_5, window_bounds = array<i64: 1, 1, 16>}, {transform_indices = @transform_6, window_bounds = array<i64: 1, 1, 16>}, {transform_indices = @transform_7, window_bounds = array<i64: 1, 1, 8>}, {transform_indices = @transform_8, window_bounds = array<i64: 1, 1, 8, 16>}]} {
    %c0 = arith.constant 0 : index
    %c0_0 = arith.constant 0 : index
    %c0_1 = arith.constant 0 : index
    %0 = vector.load %arg2[%c0, %c0_0, %c0_1] : memref<1x8x32xbf16, #tpu.memory_space<vmem>>, vector<1x8x32xbf16>
    %1 = vector.shape_cast %0 : vector<1x8x32xbf16> to vector<8x32xbf16>
    %c0_2 = arith.constant 0 : index
    %c0_3 = arith.constant 0 : index
    %c0_4 = arith.constant 0 : index
    %2 = vector.load %arg3[%c0_2, %c0_3, %c0_4] : memref<1x32x16xbf16, #tpu.memory_space<vmem>>, vector<1x32x16xbf16>
    %3 = vector.shape_cast %2 : vector<1x32x16xbf16> to vector<32x16xbf16>
    %c0_5 = arith.constant 0 : index
    %c0_6 = arith.constant 0 : index
    %c0_7 = arith.constant 0 : index
    %4 = vector.load %arg4[%c0_5, %c0_6, %c0_7] : memref<1x32x16xbf16, #tpu.memory_space<vmem>>, vector<1x32x16xbf16>
    %5 = vector.shape_cast %4 : vector<1x32x16xbf16> to vector<32x16xbf16>
    %c0_8 = arith.constant 0 : index
    %c0_9 = arith.constant 0 : index
    %c0_10 = arith.constant 0 : index
    %6 = vector.load %arg5[%c0_8, %c0_9, %c0_10] : memref<1x32x16xbf16, #tpu.memory_space<vmem>>, vector<1x32x16xbf16>
    %7 = vector.shape_cast %6 : vector<1x32x16xbf16> to vector<32x16xbf16>
    %c0_11 = arith.constant 0 : index
    %c0_12 = arith.constant 0 : index
    %c0_13 = arith.constant 0 : index
    %8 = vector.load %arg6[%c0_11, %c0_12, %c0_13] : memref<1x1x16xf32, #tpu.memory_space<vmem>>, vector<1x1x16xf32>
    %9 = vector.shape_cast %8 : vector<1x1x16xf32> to vector<1x16xf32>
    %c0_14 = arith.constant 0 : index
    %c0_15 = arith.constant 0 : index
    %c0_16 = arith.constant 0 : index
    %10 = vector.load %arg7[%c0_14, %c0_15, %c0_16] : memref<1x1x16xf32, #tpu.memory_space<vmem>>, vector<1x1x16xf32>
    %11 = vector.shape_cast %10 : vector<1x1x16xf32> to vector<1x16xf32>
    %c0_17 = arith.constant 0 : index
    %c0_18 = arith.constant 0 : index
    %c0_19 = arith.constant 0 : index
    %12 = vector.load %arg8[%c0_17, %c0_18, %c0_19] : memref<1x1x16xf32, #tpu.memory_space<vmem>>, vector<1x1x16xf32>
    %13 = vector.shape_cast %12 : vector<1x1x16xf32> to vector<1x16xf32>
    %c0_20 = arith.constant 0 : index
    %c0_21 = arith.constant 0 : index
    %c0_22 = arith.constant 0 : index
    %14 = vector.load %arg9[%c0_20, %c0_21, %c0_22] : memref<1x1x8xf32, #tpu.memory_space<vmem>>, vector<1x1x8xf32>
    %15 = vector.shape_cast %14 : vector<1x1x8xf32> to vector<1x8xf32>
    %cst = arith.constant dense<0.000000e+00> : vector<8x16xf32>
    %16 = tpu.matmul %1, %3, %cst {dimension_numbers = #tpu.dot_dimension_numbers<[1], [0], [0], [1], [0, 0, 1, 1], [], []>} : vector<8x32xbf16>, vector<32x16xbf16>, vector<8x16xf32> -> vector<8x16xf32>
    %17 = vector.broadcast %9 : vector<1x16xf32> to vector<8x16xf32>
    %18 = arith.addf %16, %17 : vector<8x16xf32>
    %cst_23 = arith.constant 2.500000e-01 : f32
    %19 = vector.broadcast %cst_23 : f32 to vector<8x16xf32>
    %20 = arith.mulf %18, %19 : vector<8x16xf32>
    %cst_24 = arith.constant dense<0.000000e+00> : vector<8x16xf32>
    %21 = tpu.matmul %1, %5, %cst_24 {dimension_numbers = #tpu.dot_dimension_numbers<[1], [0], [0], [1], [0, 0, 1, 1], [], []>} : vector<8x32xbf16>, vector<32x16xbf16>, vector<8x16xf32> -> vector<8x16xf32>
    %22 = vector.broadcast %11 : vector<1x16xf32> to vector<8x16xf32>
    %23 = arith.addf %21, %22 : vector<8x16xf32>
    %cst_25 = arith.constant dense<0.000000e+00> : vector<8x16xf32>
    %24 = tpu.matmul %1, %7, %cst_25 {dimension_numbers = #tpu.dot_dimension_numbers<[1], [0], [0], [1], [0, 0, 1, 1], [], []>} : vector<8x32xbf16>, vector<32x16xbf16>, vector<8x16xf32> -> vector<8x16xf32>
    %25 = vector.broadcast %13 : vector<1x16xf32> to vector<8x16xf32>
    %26 = arith.addf %24, %25 : vector<8x16xf32>
    %27 = arith.truncf %20 : vector<8x16xf32> to vector<8x16xbf16>
    %28 = arith.truncf %23 : vector<8x16xf32> to vector<8x16xbf16>
    %cst_26 = arith.constant dense<0.000000e+00> : vector<8x8xf32>
    %29 = tpu.matmul %27, %28, %cst_26 {dimension_numbers = #tpu.dot_dimension_numbers<[1], [1], [0], [0], [0, 0, 1, 0], [], []>} : vector<8x16xbf16>, vector<8x16xbf16>, vector<8x8xf32> -> vector<8x8xf32>
    %30 = vector.broadcast %15 : vector<1x8xf32> to vector<8x8xf32>
    %31 = arith.addf %29, %30 : vector<8x8xf32>
    %cst_27 = arith.constant dense<0xFF800000> : vector<8xf32>
    %32 = vector.multi_reduction <maximumf>, %31, %cst_27 [1] : vector<8x8xf32> to vector<8xf32>
    %33 = vector.shape_cast %32 : vector<8xf32> to vector<8x1xf32>
    %34 = vector.broadcast %33 : vector<8x1xf32> to vector<8x8xf32>
    %35 = arith.subf %31, %34 : vector<8x8xf32>
    %36 = math.exp %35 : vector<8x8xf32>
    %cst_28 = arith.constant dense<0.000000e+00> : vector<8xf32>
    %37 = vector.multi_reduction <add>, %36, %cst_28 [1] : vector<8x8xf32> to vector<8xf32>
    %38 = vector.shape_cast %37 : vector<8xf32> to vector<8x1xf32>
    %39 = tpu.reciprocal %38 {approx = true} : vector<8x1xf32> -> vector<8x1xf32>
    %40 = vector.broadcast %39 : vector<8x1xf32> to vector<8x8xf32>
    %41 = arith.mulf %36, %40 : vector<8x8xf32>
    %42 = arith.truncf %41 : vector<8x8xf32> to vector<8x8xbf16>
    %43 = arith.truncf %26 : vector<8x16xf32> to vector<8x16xbf16>
    %cst_29 = arith.constant dense<0.000000e+00> : vector<8x16xf32>
    %44 = tpu.matmul %42, %43, %cst_29 {dimension_numbers = #tpu.dot_dimension_numbers<[1], [0], [0], [1], [0, 0, 1, 1], [], []>} : vector<8x8xbf16>, vector<8x16xbf16>, vector<8x16xf32> -> vector<8x16xf32>
    %45 = vector.shape_cast %44 : vector<8x16xf32> to vector<1x1x8x16xf32>
    %46 = arith.truncf %45 : vector<1x1x8x16xf32> to vector<1x1x8x16xbf16>
    %c0_30 = arith.constant 0 : index
    %c0_31 = arith.constant 0 : index
    %c0_32 = arith.constant 0 : index
    %c0_33 = arith.constant 0 : index
    %47 = vector.load %arg10[%c0_30, %c0_31, %c0_32, %c0_33] : memref<1x1x8x16xbf16, #tpu.memory_space<vmem>>, vector<1x1x8x16xbf16>
    tpu.vector_store %arg10[%c0_30, %c0_31, %c0_32, %c0_33], %46 {strides = array<i32>} : memref<1x1x8x16xbf16, #tpu.memory_space<vmem>>, vector<1x1x8x16xbf16>,
    return
  }
  func.func @transform_0(%arg0: i32, %arg1: i32) -> (i32, i32, i32) {
    %c0_i32 = arith.constant 0 : i32
    %c0_i32_0 = arith.constant 0 : i32
    %c0_i32_1 = arith.constant 0 : i32
    return %arg0, %c0_i32, %c0_i32_0 : i32, i32, i32
  }
  func.func @transform_1(%arg0: i32, %arg1: i32) -> (i32, i32, i32) {
    %c0_i32 = arith.constant 0 : i32
    %c0_i32_0 = arith.constant 0 : i32
    %c0_i32_1 = arith.constant 0 : i32
    return %arg1, %c0_i32, %c0_i32_0 : i32, i32, i32
  }
  func.func @transform_2(%arg0: i32, %arg1: i32) -> (i32, i32, i32) {
    %c0_i32 = arith.constant 0 : i32
    %c0_i32_0 = arith.constant 0 : i32
    %c0_i32_1 = arith.constant 0 : i32
    return %arg1, %c0_i32, %c0_i32_0 : i32, i32, i32
  }
  func.func @transform_3(%arg0: i32, %arg1: i32) -> (i32, i32, i32) {
    %c0_i32 = arith.constant 0 : i32
    %c0_i32_0 = arith.constant 0 : i32
    %c0_i32_1 = arith.constant 0 : i32
    return %arg1, %c0_i32, %c0_i32_0 : i32, i32, i32
  }
  func.func @transform_4(%arg0: i32, %arg1: i32) -> (i32, i32, i32) {
    %c0_i32 = arith.constant 0 : i32
    %c0_i32_0 = arith.constant 0 : i32
    %c0_i32_1 = arith.constant 0 : i32
    return %arg1, %c0_i32, %c0_i32_0 : i32, i32, i32
  }
  func.func @transform_5(%arg0: i32, %arg1: i32) -> (i32, i32, i32) {
    %c0_i32 = arith.constant 0 : i32
    %c0_i32_0 = arith.constant 0 : i32
    %c0_i32_1 = arith.constant 0 : i32
    return %arg1, %c0_i32, %c0_i32_0 : i32, i32, i32
  }
  func.func @transform_6(%arg0: i32, %arg1: i32) -> (i32, i32, i32) {
    %c0_i32 = arith.constant 0 : i32
    %c0_i32_0 = arith.constant 0 : i32
    %c0_i32_1 = arith.constant 0 : i32
    return %arg1, %c0_i32, %c0_i32_0 : i32, i32, i32
  }
  func.func @transform_7(%arg0: i32, %arg1: i32) -> (i32, i32, i32) {
    %c0_i32 = arith.constant 0 : i32
    %c0_i32_0 = arith.constant 0 : i32
    %c0_i32_1 = arith.constant 0 : i32
    return %arg0, %c0_i32, %c0_i32_0 : i32, i32, i32
  }
  func.func @transform_8(%arg0: i32, %arg1: i32) -> (i32, i32, i32, i32) {
    %c0_i32 = arith.constant 0 : i32
    %c0_i32_0 = arith.constant 0 : i32
    %c0_i32_1 = arith.constant 0 : i32
    return %arg0, %arg1, %c0_i32, %c0_i32_0 : i32, i32, i32, i32
  }
}

module attributes {stable_mosaic.version = 11 : i64} {
  func.func @_linear_add_ln_kernel(%arg0: i32, %arg1: memref<16x32xbf16, #tpu.memory_space<vmem>>, %arg2: memref<32x32xbf16, #tpu.memory_space<vmem>>, %arg3: memref<1x32xf32, #tpu.memory_space<vmem>>, %arg4: memref<16x32xbf16, #tpu.memory_space<vmem>>, %arg5: memref<1x32xf32, #tpu.memory_space<vmem>>, %arg6: memref<1x32xf32, #tpu.memory_space<vmem>>, %arg7: memref<16x32xbf16, #tpu.memory_space<vmem>>) attributes {dimension_semantics = [#tpu.dimension_semantics<parallel>], iteration_bounds = array<i64: 1>, scalar_prefetch = 0 : i64, scratch_operands = 0 : i64, tpu.core_type = #tpu.core_type<tc>, window_params = [{transform_indices = @transform_0, window_bounds = array<i64: 16, 32>}, {pipeline_mode = #tpu.pipeline_mode<synchronous>, transform_indices = @transform_1, window_bounds = array<i64: 32, 32>}, {pipeline_mode = #tpu.pipeline_mode<synchronous>, transform_indices = @transform_2, window_bounds = array<i64: 1, 32>}, {transform_indices = @transform_3, window_bounds = array<i64: 16, 32>}, {pipeline_mode = #tpu.pipeline_mode<synchronous>, transform_indices = @transform_4, window_bounds = array<i64: 1, 32>}, {pipeline_mode = #tpu.pipeline_mode<synchronous>, transform_indices = @transform_5, window_bounds = array<i64: 1, 32>}, {transform_indices = @transform_6, window_bounds = array<i64: 16, 32>}]} {
    %c0 = arith.constant 0 : index
    %c0_0 = arith.constant 0 : index
    %0 = vector.load %arg1[%c0, %c0_0] : memref<16x32xbf16, #tpu.memory_space<vmem>>, vector<16x32xbf16>
    %c0_1 = arith.constant 0 : index
    %c0_2 = arith.constant 0 : index
    %1 = vector.load %arg2[%c0_1, %c0_2] : memref<32x32xbf16, #tpu.memory_space<vmem>>, vector<32x32xbf16>
    %cst = arith.constant dense<0.000000e+00> : vector<16x32xf32>
    %2 = tpu.matmul %0, %1, %cst {dimension_numbers = #tpu.dot_dimension_numbers<[1], [0], [0], [1], [0, 0, 1, 1], [], []>} : vector<16x32xbf16>, vector<32x32xbf16>, vector<16x32xf32> -> vector<16x32xf32>
    %c0_3 = arith.constant 0 : index
    %c0_4 = arith.constant 0 : index
    %3 = vector.load %arg3[%c0_3, %c0_4] : memref<1x32xf32, #tpu.memory_space<vmem>>, vector<1x32xf32>
    %4 = vector.broadcast %3 : vector<1x32xf32> to vector<16x32xf32>
    %5 = arith.addf %2, %4 : vector<16x32xf32>
    %c0_5 = arith.constant 0 : index
    %c0_6 = arith.constant 0 : index
    %6 = vector.load %arg4[%c0_5, %c0_6] : memref<16x32xbf16, #tpu.memory_space<vmem>>, vector<16x32xbf16>
    %7 = arith.extf %6 : vector<16x32xbf16> to vector<16x32xf32>
    %8 = arith.addf %5, %7 : vector<16x32xf32>
    %cst_7 = arith.constant dense<0.000000e+00> : vector<16xf32>
    %9 = vector.multi_reduction <add>, %8, %cst_7 [1] : vector<16x32xf32> to vector<16xf32>
    %10 = vector.shape_cast %9 : vector<16xf32> to vector<16x1xf32>
    %cst_8 = arith.constant 3.200000e+01 : f32
    %11 = vector.broadcast %cst_8 : f32 to vector<16x1xf32>
    %12 = arith.divf %10, %11 : vector<16x1xf32>
    %13 = vector.broadcast %12 : vector<16x1xf32> to vector<16x32xf32>
    %14 = arith.subf %8, %13 : vector<16x32xf32>
    %15 = arith.mulf %14, %14 : vector<16x32xf32>
    %cst_9 = arith.constant dense<0.000000e+00> : vector<16xf32>
    %16 = vector.multi_reduction <add>, %15, %cst_9 [1] : vector<16x32xf32> to vector<16xf32>
    %17 = vector.shape_cast %16 : vector<16xf32> to vector<16x1xf32>
    %cst_10 = arith.constant 3.200000e+01 : f32
    %18 = vector.broadcast %cst_10 : f32 to vector<16x1xf32>
    %19 = arith.divf %17, %18 : vector<16x1xf32>
    %20 = vector.broadcast %12 : vector<16x1xf32> to vector<16x32xf32>
    %21 = arith.subf %8, %20 : vector<16x32xf32>
    %cst_11 = arith.constant 9.99999996E-13 : f32
    %22 = vector.broadcast %cst_11 : f32 to vector<16x1xf32>
    %23 = arith.addf %19, %22 : vector<16x1xf32>
    %24 = math.rsqrt %23 : vector<16x1xf32>
    %25 = vector.broadcast %24 : vector<16x1xf32> to vector<16x32xf32>
    %26 = arith.mulf %21, %25 : vector<16x32xf32>
    %c0_12 = arith.constant 0 : index
    %c0_13 = arith.constant 0 : index
    %27 = vector.load %arg5[%c0_12, %c0_13] : memref<1x32xf32, #tpu.memory_space<vmem>>, vector<1x32xf32>
    %28 = vector.broadcast %27 : vector<1x32xf32> to vector<16x32xf32>
    %29 = arith.mulf %26, %28 : vector<16x32xf32>
    %c0_14 = arith.constant 0 : index
    %c0_15 = arith.constant 0 : index
    %30 = vector.load %arg6[%c0_14, %c0_15] : memref<1x32xf32, #tpu.memory_space<vmem>>, vector<1x32xf32>
    %31 = vector.broadcast %30 : vector<1x32xf32> to vector<16x32xf32>
    %32 = arith.addf %29, %31 : vector<16x32xf32>
    %33 = arith.truncf %32 : vector<16x32xf32> to vector<16x32xbf16>
    %c0_16 = arith.constant 0 : index
    %c0_17 = arith.constant 0 : index
    %34 = vector.load %arg7[%c0_16, %c0_17] : memref<16x32xbf16, #tpu.memory_space<vmem>>, vector<16x32xbf16>
    tpu.vector_store %arg7[%c0_16, %c0_17], %33 {strides = array<i32>} : memref<16x32xbf16, #tpu.memory_space<vmem>>, vector<16x32xbf16>,
    return
  }
  func.func @transform_0(%arg0: i32) -> (i32, i32) {
    %c0_i32 = arith.constant 0 : i32
    %c0_i32_0 = arith.constant 0 : i32
    return %arg0, %c0_i32 : i32, i32
  }
  func.func @transform_1(%arg0: i32) -> (i32, i32) {
    %c0_i32 = arith.constant 0 : i32
    %c0_i32_0 = arith.constant 0 : i32
    %c0_i32_1 = arith.constant 0 : i32
    return %c0_i32, %c0_i32_0 : i32, i32
  }
  func.func @transform_2(%arg0: i32) -> (i32, i32) {
    %c0_i32 = arith.constant 0 : i32
    %c0_i32_0 = arith.constant 0 : i32
    %c0_i32_1 = arith.constant 0 : i32
    return %c0_i32, %c0_i32_0 : i32, i32
  }
  func.func @transform_3(%arg0: i32) -> (i32, i32) {
    %c0_i32 = arith.constant 0 : i32
    %c0_i32_0 = arith.constant 0 : i32
    return %arg0, %c0_i32 : i32, i32
  }
  func.func @transform_4(%arg0: i32) -> (i32, i32) {
    %c0_i32 = arith.constant 0 : i32
    %c0_i32_0 = arith.constant 0 : i32
    %c0_i32_1 = arith.constant 0 : i32
    return %c0_i32, %c0_i32_0 : i32, i32
  }
  func.func @transform_5(%arg0: i32) -> (i32, i32) {
    %c0_i32 = arith.constant 0 : i32
    %c0_i32_0 = arith.constant 0 : i32
    %c0_i32_1 = arith.constant 0 : i32
    return %c0_i32, %c0_i32_0 : i32, i32
  }
  func.func @transform_6(%arg0: i32) -> (i32, i32) {
    %c0_i32 = arith.constant 0 : i32
    %c0_i32_0 = arith.constant 0 : i32
    return %arg0, %c0_i32 : i32, i32
  }
}

module attributes {stable_mosaic.version = 11 : i64} {
  func.func @_linear_kernel(%arg0: i32, %arg1: i32, %arg2: memref<16x32xbf16, #tpu.memory_space<vmem>>, %arg3: memref<32x64xbf16, #tpu.memory_space<vmem>>, %arg4: memref<1x64xf32, #tpu.memory_space<vmem>>, %arg5: memref<16x64xbf16, #tpu.memory_space<vmem>>) attributes {dimension_semantics = [#tpu.dimension_semantics<parallel>, #tpu.dimension_semantics<parallel>], iteration_bounds = array<i64: 1, 1>, scalar_prefetch = 0 : i64, scratch_operands = 0 : i64, tpu.core_type = #tpu.core_type<tc>, window_params = [{transform_indices = @transform_0, window_bounds = array<i64: 16, 32>}, {transform_indices = @transform_1, window_bounds = array<i64: 32, 64>}, {transform_indices = @transform_2, window_bounds = array<i64: 1, 64>}, {transform_indices = @transform_3, window_bounds = array<i64: 16, 64>}]} {
    %c0 = arith.constant 0 : index
    %c0_0 = arith.constant 0 : index
    %0 = vector.load %arg2[%c0, %c0_0] : memref<16x32xbf16, #tpu.memory_space<vmem>>, vector<16x32xbf16>
    %c0_1 = arith.constant 0 : index
    %c0_2 = arith.constant 0 : index
    %1 = vector.load %arg3[%c0_1, %c0_2] : memref<32x64xbf16, #tpu.memory_space<vmem>>, vector<32x64xbf16>
    %cst = arith.constant dense<0.000000e+00> : vector<16x64xf32>
    %2 = tpu.matmul %0, %1, %cst {dimension_numbers = #tpu.dot_dimension_numbers<[1], [0], [0], [1], [0, 0, 1, 1], [], []>} : vector<16x32xbf16>, vector<32x64xbf16>, vector<16x64xf32> -> vector<16x64xf32>
    %c0_3 = arith.constant 0 : index
    %c0_4 = arith.constant 0 : index
    %3 = vector.load %arg4[%c0_3, %c0_4] : memref<1x64xf32, #tpu.memory_space<vmem>>, vector<1x64xf32>
    %4 = vector.broadcast %3 : vector<1x64xf32> to vector<16x64xf32>
    %5 = arith.addf %2, %4 : vector<16x64xf32>
    %cst_5 = arith.constant 5.000000e-01 : f32
    %6 = vector.broadcast %cst_5 : f32 to vector<16x64xf32>
    %7 = arith.mulf %6, %5 : vector<16x64xf32>
    %cst_6 = arith.constant 0.707106769 : f32
    %8 = vector.broadcast %cst_6 : f32 to vector<16x64xf32>
    %9 = arith.mulf %5, %8 : vector<16x64xf32>
    %10 = math.erf %9 : vector<16x64xf32>
    %cst_7 = arith.constant 1.000000e+00 : f32
    %11 = vector.broadcast %cst_7 : f32 to vector<16x64xf32>
    %12 = arith.addf %11, %10 : vector<16x64xf32>
    %13 = arith.mulf %7, %12 : vector<16x64xf32>
    %14 = arith.truncf %13 : vector<16x64xf32> to vector<16x64xbf16>
    %c0_8 = arith.constant 0 : index
    %c0_9 = arith.constant 0 : index
    %15 = vector.load %arg5[%c0_8, %c0_9] : memref<16x64xbf16, #tpu.memory_space<vmem>>, vector<16x64xbf16>
    tpu.vector_store %arg5[%c0_8, %c0_9], %14 {strides = array<i32>} : memref<16x64xbf16, #tpu.memory_space<vmem>>, vector<16x64xbf16>,
    return
  }
  func.func @transform_0(%arg0: i32, %arg1: i32) -> (i32, i32) {
    %c0_i32 = arith.constant 0 : i32
    %c0_i32_0 = arith.constant 0 : i32
    return %arg0, %c0_i32 : i32, i32
  }
  func.func @transform_1(%arg0: i32, %arg1: i32) -> (i32, i32) {
    %c0_i32 = arith.constant 0 : i32
    %c0_i32_0 = arith.constant 0 : i32
    return %c0_i32, %arg1 : i32, i32
  }
  func.func @transform_2(%arg0: i32, %arg1: i32) -> (i32, i32) {
    %c0_i32 = arith.constant 0 : i32
    %c0_i32_0 = arith.constant 0 : i32
    return %c0_i32, %arg1 : i32, i32
  }
  func.func @transform_3(%arg0: i32, %arg1: i32) -> (i32, i32) {
    %c0_i32 = arith.constant 0 : i32
    return %arg0, %arg1 : i32, i32
  }
}

module attributes {stable_mosaic.version = 11 : i64} {
  func.func @_linear_add_ln_kernel(%arg0: i32, %arg1: memref<16x64xbf16, #tpu.memory_space<vmem>>, %arg2: memref<64x32xbf16, #tpu.memory_space<vmem>>, %arg3: memref<1x32xf32, #tpu.memory_space<vmem>>, %arg4: memref<16x32xbf16, #tpu.memory_space<vmem>>, %arg5: memref<1x32xf32, #tpu.memory_space<vmem>>, %arg6: memref<1x32xf32, #tpu.memory_space<vmem>>, %arg7: memref<16x32xbf16, #tpu.memory_space<vmem>>) attributes {dimension_semantics = [#tpu.dimension_semantics<parallel>], iteration_bounds = array<i64: 1>, scalar_prefetch = 0 : i64, scratch_operands = 0 : i64, tpu.core_type = #tpu.core_type<tc>, window_params = [{transform_indices = @transform_0, window_bounds = array<i64: 16, 64>}, {pipeline_mode = #tpu.pipeline_mode<synchronous>, transform_indices = @transform_1, window_bounds = array<i64: 64, 32>}, {pipeline_mode = #tpu.pipeline_mode<synchronous>, transform_indices = @transform_2, window_bounds = array<i64: 1, 32>}, {transform_indices = @transform_3, window_bounds = array<i64: 16, 32>}, {pipeline_mode = #tpu.pipeline_mode<synchronous>, transform_indices = @transform_4, window_bounds = array<i64: 1, 32>}, {pipeline_mode = #tpu.pipeline_mode<synchronous>, transform_indices = @transform_5, window_bounds = array<i64: 1, 32>}, {transform_indices = @transform_6, window_bounds = array<i64: 16, 32>}]} {
    %c0 = arith.constant 0 : index
    %c0_0 = arith.constant 0 : index
    %0 = vector.load %arg1[%c0, %c0_0] : memref<16x64xbf16, #tpu.memory_space<vmem>>, vector<16x64xbf16>
    %c0_1 = arith.constant 0 : index
    %c0_2 = arith.constant 0 : index
    %1 = vector.load %arg2[%c0_1, %c0_2] : memref<64x32xbf16, #tpu.memory_space<vmem>>, vector<64x32xbf16>
    %cst = arith.constant dense<0.000000e+00> : vector<16x32xf32>
    %2 = tpu.matmul %0, %1, %cst {dimension_numbers = #tpu.dot_dimension_numbers<[1], [0], [0], [1], [0, 0, 1, 1], [], []>} : vector<16x64xbf16>, vector<64x32xbf16>, vector<16x32xf32> -> vector<16x32xf32>
    %c0_3 = arith.constant 0 : index
    %c0_4 = arith.constant 0 : index
    %3 = vector.load %arg3[%c0_3, %c0_4] : memref<1x32xf32, #tpu.memory_space<vmem>>, vector<1x32xf32>
    %4 = vector.broadcast %3 : vector<1x32xf32> to vector<16x32xf32>
    %5 = arith.addf %2, %4 : vector<16x32xf32>
    %c0_5 = arith.constant 0 : index
    %c0_6 = arith.constant 0 : index
    %6 = vector.load %arg4[%c0_5, %c0_6] : memref<16x32xbf16, #tpu.memory_space<vmem>>, vector<16x32xbf16>
    %7 = arith.extf %6 : vector<16x32xbf16> to vector<16x32xf32>
    %8 = arith.addf %5, %7 : vector<16x32xf32>
    %cst_7 = arith.constant dense<0.000000e+00> : vector<16xf32>
    %9 = vector.multi_reduction <add>, %8, %cst_7 [1] : vector<16x32xf32> to vector<16xf32>
    %10 = vector.shape_cast %9 : vector<16xf32> to vector<16x1xf32>
    %cst_8 = arith.constant 3.200000e+01 : f32
    %11 = vector.broadcast %cst_8 : f32 to vector<16x1xf32>
    %12 = arith.divf %10, %11 : vector<16x1xf32>
    %13 = vector.broadcast %12 : vector<16x1xf32> to vector<16x32xf32>
    %14 = arith.subf %8, %13 : vector<16x32xf32>
    %15 = arith.mulf %14, %14 : vector<16x32xf32>
    %cst_9 = arith.constant dense<0.000000e+00> : vector<16xf32>
    %16 = vector.multi_reduction <add>, %15, %cst_9 [1] : vector<16x32xf32> to vector<16xf32>
    %17 = vector.shape_cast %16 : vector<16xf32> to vector<16x1xf32>
    %cst_10 = arith.constant 3.200000e+01 : f32
    %18 = vector.broadcast %cst_10 : f32 to vector<16x1xf32>
    %19 = arith.divf %17, %18 : vector<16x1xf32>
    %20 = vector.broadcast %12 : vector<16x1xf32> to vector<16x32xf32>
    %21 = arith.subf %8, %20 : vector<16x32xf32>
    %cst_11 = arith.constant 9.99999996E-13 : f32
    %22 = vector.broadcast %cst_11 : f32 to vector<16x1xf32>
    %23 = arith.addf %19, %22 : vector<16x1xf32>
    %24 = math.rsqrt %23 : vector<16x1xf32>
    %25 = vector.broadcast %24 : vector<16x1xf32> to vector<16x32xf32>
    %26 = arith.mulf %21, %25 : vector<16x32xf32>
    %c0_12 = arith.constant 0 : index
    %c0_13 = arith.constant 0 : index
    %27 = vector.load %arg5[%c0_12, %c0_13] : memref<1x32xf32, #tpu.memory_space<vmem>>, vector<1x32xf32>
    %28 = vector.broadcast %27 : vector<1x32xf32> to vector<16x32xf32>
    %29 = arith.mulf %26, %28 : vector<16x32xf32>
    %c0_14 = arith.constant 0 : index
    %c0_15 = arith.constant 0 : index
    %30 = vector.load %arg6[%c0_14, %c0_15] : memref<1x32xf32, #tpu.memory_space<vmem>>, vector<1x32xf32>
    %31 = vector.broadcast %30 : vector<1x32xf32> to vector<16x32xf32>
    %32 = arith.addf %29, %31 : vector<16x32xf32>
    %33 = arith.truncf %32 : vector<16x32xf32> to vector<16x32xbf16>
    %c0_16 = arith.constant 0 : index
    %c0_17 = arith.constant 0 : index
    %34 = vector.load %arg7[%c0_16, %c0_17] : memref<16x32xbf16, #tpu.memory_space<vmem>>, vector<16x32xbf16>
    tpu.vector_store %arg7[%c0_16, %c0_17], %33 {strides = array<i32>} : memref<16x32xbf16, #tpu.memory_space<vmem>>, vector<16x32xbf16>,
    return
  }
  func.func @transform_0(%arg0: i32) -> (i32, i32) {
    %c0_i32 = arith.constant 0 : i32
    %c0_i32_0 = arith.constant 0 : i32
    return %arg0, %c0_i32 : i32, i32
  }
  func.func @transform_1(%arg0: i32) -> (i32, i32) {
    %c0_i32 = arith.constant 0 : i32
    %c0_i32_0 = arith.constant 0 : i32
    %c0_i32_1 = arith.constant 0 : i32
    return %c0_i32, %c0_i32_0 : i32, i32
  }
  func.func @transform_2(%arg0: i32) -> (i32, i32) {
    %c0_i32 = arith.constant 0 : i32
    %c0_i32_0 = arith.constant 0 : i32
    %c0_i32_1 = arith.constant 0 : i32
    return %c0_i32, %c0_i32_0 : i32, i32
  }
  func.func @transform_3(%arg0: i32) -> (i32, i32) {
    %c0_i32 = arith.constant 0 : i32
    %c0_i32_0 = arith.constant 0 : i32
    return %arg0, %c0_i32 : i32, i32
  }
  func.func @transform_4(%arg0: i32) -> (i32, i32) {
    %c0_i32 = arith.constant 0 : i32
    %c0_i32_0 = arith.constant 0 : i32
    %c0_i32_1 = arith.constant 0 : i32
    return %c0_i32, %c0_i32_0 : i32, i32
  }
  func.func @transform_5(%arg0: i32) -> (i32, i32) {
    %c0_i32 = arith.constant 0 : i32
    %c0_i32_0 = arith.constant 0 : i32
    %c0_i32_1 = arith.constant 0 : i32
    return %c0_i32, %c0_i32_0 : i32, i32
  }
  func.func @transform_6(%arg0: i32) -> (i32, i32) {
    %c0_i32 = arith.constant 0 : i32
    %c0_i32_0 = arith.constant 0 : i32
    return %arg0, %c0_i32 : i32, i32
  }
}

module attributes {stable_mosaic.version = 11 : i64} {
  func.func @_linear_kernel(%arg0: i32, %arg1: i32, %arg2: memref<8x32xbf16, #tpu.memory_space<vmem>>, %arg3: memref<32x64xbf16, #tpu.memory_space<vmem>>, %arg4: memref<1x64xf32, #tpu.memory_space<vmem>>, %arg5: memref<8x64xbf16, #tpu.memory_space<vmem>>) attributes {dimension_semantics = [#tpu.dimension_semantics<parallel>, #tpu.dimension_semantics<parallel>], iteration_bounds = array<i64: 1, 1>, scalar_prefetch = 0 : i64, scratch_operands = 0 : i64, tpu.core_type = #tpu.core_type<tc>, window_params = [{transform_indices = @transform_0, window_bounds = array<i64: 8, 32>}, {transform_indices = @transform_1, window_bounds = array<i64: 32, 64>}, {transform_indices = @transform_2, window_bounds = array<i64: 1, 64>}, {transform_indices = @transform_3, window_bounds = array<i64: 8, 64>}]} {
    %c0 = arith.constant 0 : index
    %c0_0 = arith.constant 0 : index
    %0 = vector.load %arg2[%c0, %c0_0] : memref<8x32xbf16, #tpu.memory_space<vmem>>, vector<8x32xbf16>
    %c0_1 = arith.constant 0 : index
    %c0_2 = arith.constant 0 : index
    %1 = vector.load %arg3[%c0_1, %c0_2] : memref<32x64xbf16, #tpu.memory_space<vmem>>, vector<32x64xbf16>
    %cst = arith.constant dense<0.000000e+00> : vector<8x64xf32>
    %2 = tpu.matmul %0, %1, %cst {dimension_numbers = #tpu.dot_dimension_numbers<[1], [0], [0], [1], [0, 0, 1, 1], [], []>} : vector<8x32xbf16>, vector<32x64xbf16>, vector<8x64xf32> -> vector<8x64xf32>
    %c0_3 = arith.constant 0 : index
    %c0_4 = arith.constant 0 : index
    %3 = vector.load %arg4[%c0_3, %c0_4] : memref<1x64xf32, #tpu.memory_space<vmem>>, vector<1x64xf32>
    %4 = vector.broadcast %3 : vector<1x64xf32> to vector<8x64xf32>
    %5 = arith.addf %2, %4 : vector<8x64xf32>
    %cst_5 = arith.constant 5.000000e-01 : f32
    %6 = vector.broadcast %cst_5 : f32 to vector<8x64xf32>
    %7 = arith.mulf %6, %5 : vector<8x64xf32>
    %cst_6 = arith.constant 0.707106769 : f32
    %8 = vector.broadcast %cst_6 : f32 to vector<8x64xf32>
    %9 = arith.mulf %5, %8 : vector<8x64xf32>
    %10 = math.erf %9 : vector<8x64xf32>
    %cst_7 = arith.constant 1.000000e+00 : f32
    %11 = vector.broadcast %cst_7 : f32 to vector<8x64xf32>
    %12 = arith.addf %11, %10 : vector<8x64xf32>
    %13 = arith.mulf %7, %12 : vector<8x64xf32>
    %14 = arith.truncf %13 : vector<8x64xf32> to vector<8x64xbf16>
    %c0_8 = arith.constant 0 : index
    %c0_9 = arith.constant 0 : index
    %15 = vector.load %arg5[%c0_8, %c0_9] : memref<8x64xbf16, #tpu.memory_space<vmem>>, vector<8x64xbf16>
    tpu.vector_store %arg5[%c0_8, %c0_9], %14 {strides = array<i32>} : memref<8x64xbf16, #tpu.memory_space<vmem>>, vector<8x64xbf16>,
    return
  }
  func.func @transform_0(%arg0: i32, %arg1: i32) -> (i32, i32) {
    %c0_i32 = arith.constant 0 : i32
    %c0_i32_0 = arith.constant 0 : i32
    return %arg0, %c0_i32 : i32, i32
  }
  func.func @transform_1(%arg0: i32, %arg1: i32) -> (i32, i32) {
    %c0_i32 = arith.constant 0 : i32
    %c0_i32_0 = arith.constant 0 : i32
    return %c0_i32, %arg1 : i32, i32
  }
  func.func @transform_2(%arg0: i32, %arg1: i32) -> (i32, i32) {
    %c0_i32 = arith.constant 0 : i32
    %c0_i32_0 = arith.constant 0 : i32
    return %c0_i32, %arg1 : i32, i32
  }
  func.func @transform_3(%arg0: i32, %arg1: i32) -> (i32, i32) {
    %c0_i32 = arith.constant 0 : i32
    return %arg0, %arg1 : i32, i32
  }
}

module attributes {stable_mosaic.version = 11 : i64} {
  func.func @_linear_kernel(%arg0: i32, %arg1: i32, %arg2: memref<8x64xbf16, #tpu.memory_space<vmem>>, %arg3: memref<64x32xbf16, #tpu.memory_space<vmem>>, %arg4: memref<1x32xf32, #tpu.memory_space<vmem>>, %arg5: memref<8x32xbf16, #tpu.memory_space<vmem>>) attributes {dimension_semantics = [#tpu.dimension_semantics<parallel>, #tpu.dimension_semantics<parallel>], iteration_bounds = array<i64: 1, 1>, scalar_prefetch = 0 : i64, scratch_operands = 0 : i64, tpu.core_type = #tpu.core_type<tc>, window_params = [{transform_indices = @transform_0, window_bounds = array<i64: 8, 64>}, {transform_indices = @transform_1, window_bounds = array<i64: 64, 32>}, {transform_indices = @transform_2, window_bounds = array<i64: 1, 32>}, {transform_indices = @transform_3, window_bounds = array<i64: 8, 32>}]} {
    %c0 = arith.constant 0 : index
    %c0_0 = arith.constant 0 : index
    %0 = vector.load %arg2[%c0, %c0_0] : memref<8x64xbf16, #tpu.memory_space<vmem>>, vector<8x64xbf16>
    %c0_1 = arith.constant 0 : index
    %c0_2 = arith.constant 0 : index
    %1 = vector.load %arg3[%c0_1, %c0_2] : memref<64x32xbf16, #tpu.memory_space<vmem>>, vector<64x32xbf16>
    %cst = arith.constant dense<0.000000e+00> : vector<8x32xf32>
    %2 = tpu.matmul %0, %1, %cst {dimension_numbers = #tpu.dot_dimension_numbers<[1], [0], [0], [1], [0, 0, 1, 1], [], []>} : vector<8x64xbf16>, vector<64x32xbf16>, vector<8x32xf32> -> vector<8x32xf32>
    %c0_3 = arith.constant 0 : index
    %c0_4 = arith.constant 0 : index
    %3 = vector.load %arg4[%c0_3, %c0_4] : memref<1x32xf32, #tpu.memory_space<vmem>>, vector<1x32xf32>
    %4 = vector.broadcast %3 : vector<1x32xf32> to vector<8x32xf32>
    %5 = arith.addf %2, %4 : vector<8x32xf32>
    %6 = arith.truncf %5 : vector<8x32xf32> to vector<8x32xbf16>
    %c0_5 = arith.constant 0 : index
    %c0_6 = arith.constant 0 : index
    %7 = vector.load %arg5[%c0_5, %c0_6] : memref<8x32xbf16, #tpu.memory_space<vmem>>, vector<8x32xbf16>
    tpu.vector_store %arg5[%c0_5, %c0_6], %6 {strides = array<i32>} : memref<8x32xbf16, #tpu.memory_space<vmem>>, vector<8x32xbf16>,
    return
  }
  func.func @transform_0(%arg0: i32, %arg1: i32) -> (i32, i32) {
    %c0_i32 = arith.constant 0 : i32
    %c0_i32_0 = arith.constant 0 : i32
    return %arg0, %c0_i32 : i32, i32
  }
  func.func @transform_1(%arg0: i32, %arg1: i32) -> (i32, i32) {
    %c0_i32 = arith.constant 0 : i32
    %c0_i32_0 = arith.constant 0 : i32
    return %c0_i32, %arg1 : i32, i32
  }
  func.func @transform_2(%arg0: i32, %arg1: i32) -> (i32, i32) {
    %c0_i32 = arith.constant 0 : i32
    %c0_i32_0 = arith.constant 0 : i32
    return %c0_i32, %arg1 : i32, i32
  }
  func.func @transform_3(%arg0: i32, %arg1: i32) -> (i32, i32) {
    %c0_i32 = arith.constant 0 : i32
    return %arg0, %arg1 : i32, i32
  }
}

module attributes {stable_mosaic.version = 11 : i64} {
  func.func @_cross_attn_kernel(%arg0: i32, %arg1: i32, %arg2: memref<1x4x32xbf16, #tpu.memory_space<vmem>>, %arg3: memref<1x8x32xbf16, #tpu.memory_space<vmem>>, %arg4: memref<1x32x32xbf16, #tpu.memory_space<vmem>>, %arg5: memref<1x32x32xbf16, #tpu.memory_space<vmem>>, %arg6: memref<1x32x32xbf16, #tpu.memory_space<vmem>>, %arg7: memref<1x1x32xf32, #tpu.memory_space<vmem>>, %arg8: memref<1x1x32xf32, #tpu.memory_space<vmem>>, %arg9: memref<1x1x32xf32, #tpu.memory_space<vmem>>, %arg10: memref<1x1x8xf32, #tpu.memory_space<vmem>>, %arg11: memref<1x1x4x32xbf16, #tpu.memory_space<vmem>>) attributes {dimension_semantics = [#tpu.dimension_semantics<parallel>, #tpu.dimension_semantics<parallel>], iteration_bounds = array<i64: 2, 1>, scalar_prefetch = 0 : i64, scratch_operands = 0 : i64, tpu.core_type = #tpu.core_type<tc>, window_params = [{transform_indices = @transform_0, window_bounds = array<i64: 1, 4, 32>}, {transform_indices = @transform_1, window_bounds = array<i64: 1, 8, 32>}, {transform_indices = @transform_2, window_bounds = array<i64: 1, 32, 32>}, {transform_indices = @transform_3, window_bounds = array<i64: 1, 32, 32>}, {transform_indices = @transform_4, window_bounds = array<i64: 1, 32, 32>}, {transform_indices = @transform_5, window_bounds = array<i64: 1, 1, 32>}, {transform_indices = @transform_6, window_bounds = array<i64: 1, 1, 32>}, {transform_indices = @transform_7, window_bounds = array<i64: 1, 1, 32>}, {transform_indices = @transform_8, window_bounds = array<i64: 1, 1, 8>}, {transform_indices = @transform_9, window_bounds = array<i64: 1, 1, 4, 32>}]} {
    %c0 = arith.constant 0 : index
    %c0_0 = arith.constant 0 : index
    %c0_1 = arith.constant 0 : index
    %0 = vector.load %arg2[%c0, %c0_0, %c0_1] : memref<1x4x32xbf16, #tpu.memory_space<vmem>>, vector<1x4x32xbf16>
    %1 = vector.shape_cast %0 : vector<1x4x32xbf16> to vector<4x32xbf16>
    %c0_2 = arith.constant 0 : index
    %c0_3 = arith.constant 0 : index
    %c0_4 = arith.constant 0 : index
    %2 = vector.load %arg3[%c0_2, %c0_3, %c0_4] : memref<1x8x32xbf16, #tpu.memory_space<vmem>>, vector<1x8x32xbf16>
    %3 = vector.shape_cast %2 : vector<1x8x32xbf16> to vector<8x32xbf16>
    %c0_5 = arith.constant 0 : index
    %c0_6 = arith.constant 0 : index
    %c0_7 = arith.constant 0 : index
    %4 = vector.load %arg4[%c0_5, %c0_6, %c0_7] : memref<1x32x32xbf16, #tpu.memory_space<vmem>>, vector<1x32x32xbf16>
    %5 = vector.shape_cast %4 : vector<1x32x32xbf16> to vector<32x32xbf16>
    %c0_8 = arith.constant 0 : index
    %c0_9 = arith.constant 0 : index
    %c0_10 = arith.constant 0 : index
    %6 = vector.load %arg5[%c0_8, %c0_9, %c0_10] : memref<1x32x32xbf16, #tpu.memory_space<vmem>>, vector<1x32x32xbf16>
    %7 = vector.shape_cast %6 : vector<1x32x32xbf16> to vector<32x32xbf16>
    %c0_11 = arith.constant 0 : index
    %c0_12 = arith.constant 0 : index
    %c0_13 = arith.constant 0 : index
    %8 = vector.load %arg6[%c0_11, %c0_12, %c0_13] : memref<1x32x32xbf16, #tpu.memory_space<vmem>>, vector<1x32x32xbf16>
    %9 = vector.shape_cast %8 : vector<1x32x32xbf16> to vector<32x32xbf16>
    %c0_14 = arith.constant 0 : index
    %c0_15 = arith.constant 0 : index
    %c0_16 = arith.constant 0 : index
    %10 = vector.load %arg7[%c0_14, %c0_15, %c0_16] : memref<1x1x32xf32, #tpu.memory_space<vmem>>, vector<1x1x32xf32>
    %11 = vector.shape_cast %10 : vector<1x1x32xf32> to vector<1x32xf32>
    %c0_17 = arith.constant 0 : index
    %c0_18 = arith.constant 0 : index
    %c0_19 = arith.constant 0 : index
    %12 = vector.load %arg8[%c0_17, %c0_18, %c0_19] : memref<1x1x32xf32, #tpu.memory_space<vmem>>, vector<1x1x32xf32>
    %13 = vector.shape_cast %12 : vector<1x1x32xf32> to vector<1x32xf32>
    %c0_20 = arith.constant 0 : index
    %c0_21 = arith.constant 0 : index
    %c0_22 = arith.constant 0 : index
    %14 = vector.load %arg9[%c0_20, %c0_21, %c0_22] : memref<1x1x32xf32, #tpu.memory_space<vmem>>, vector<1x1x32xf32>
    %15 = vector.shape_cast %14 : vector<1x1x32xf32> to vector<1x32xf32>
    %c0_23 = arith.constant 0 : index
    %c0_24 = arith.constant 0 : index
    %c0_25 = arith.constant 0 : index
    %16 = vector.load %arg10[%c0_23, %c0_24, %c0_25] : memref<1x1x8xf32, #tpu.memory_space<vmem>>, vector<1x1x8xf32>
    %17 = vector.shape_cast %16 : vector<1x1x8xf32> to vector<1x8xf32>
    %cst = arith.constant dense<0.000000e+00> : vector<4x32xf32>
    %18 = tpu.matmul %1, %5, %cst {dimension_numbers = #tpu.dot_dimension_numbers<[1], [0], [0], [1], [0, 0, 1, 1], [], []>} : vector<4x32xbf16>, vector<32x32xbf16>, vector<4x32xf32> -> vector<4x32xf32>
    %19 = vector.broadcast %11 : vector<1x32xf32> to vector<4x32xf32>
    %20 = arith.addf %18, %19 : vector<4x32xf32>
    %cst_26 = arith.constant 0.176776692 : f32
    %21 = vector.broadcast %cst_26 : f32 to vector<4x32xf32>
    %22 = arith.mulf %20, %21 : vector<4x32xf32>
    %cst_27 = arith.constant dense<0.000000e+00> : vector<8x32xf32>
    %23 = tpu.matmul %3, %7, %cst_27 {dimension_numbers = #tpu.dot_dimension_numbers<[1], [0], [0], [1], [0, 0, 1, 1], [], []>} : vector<8x32xbf16>, vector<32x32xbf16>, vector<8x32xf32> -> vector<8x32xf32>
    %24 = vector.broadcast %13 : vector<1x32xf32> to vector<8x32xf32>
    %25 = arith.addf %23, %24 : vector<8x32xf32>
    %cst_28 = arith.constant dense<0.000000e+00> : vector<8x32xf32>
    %26 = tpu.matmul %3, %9, %cst_28 {dimension_numbers = #tpu.dot_dimension_numbers<[1], [0], [0], [1], [0, 0, 1, 1], [], []>} : vector<8x32xbf16>, vector<32x32xbf16>, vector<8x32xf32> -> vector<8x32xf32>
    %27 = vector.broadcast %15 : vector<1x32xf32> to vector<8x32xf32>
    %28 = arith.addf %26, %27 : vector<8x32xf32>
    %29 = arith.truncf %22 : vector<4x32xf32> to vector<4x32xbf16>
    %30 = arith.truncf %25 : vector<8x32xf32> to vector<8x32xbf16>
    %cst_29 = arith.constant dense<0.000000e+00> : vector<4x8xf32>
    %31 = tpu.matmul %29, %30, %cst_29 {dimension_numbers = #tpu.dot_dimension_numbers<[1], [1], [0], [0], [0, 0, 1, 0], [], []>} : vector<4x32xbf16>, vector<8x32xbf16>, vector<4x8xf32> -> vector<4x8xf32>
    %32 = vector.broadcast %17 : vector<1x8xf32> to vector<4x8xf32>
    %33 = arith.addf %31, %32 : vector<4x8xf32>
    %cst_30 = arith.constant dense<0xFF800000> : vector<4xf32>
    %34 = vector.multi_reduction <maximumf>, %33, %cst_30 [1] : vector<4x8xf32> to vector<4xf32>
    %35 = vector.shape_cast %34 : vector<4xf32> to vector<4x1xf32>
    %36 = vector.broadcast %35 : vector<4x1xf32> to vector<4x8xf32>
    %37 = arith.subf %33, %36 : vector<4x8xf32>
    %38 = math.exp %37 : vector<4x8xf32>
    %cst_31 = arith.constant dense<0.000000e+00> : vector<4xf32>
    %39 = vector.multi_reduction <add>, %38, %cst_31 [1] : vector<4x8xf32> to vector<4xf32>
    %40 = vector.shape_cast %39 : vector<4xf32> to vector<4x1xf32>
    %41 = tpu.reciprocal %40 {approx = true} : vector<4x1xf32> -> vector<4x1xf32>
    %42 = vector.broadcast %41 : vector<4x1xf32> to vector<4x8xf32>
    %43 = arith.mulf %38, %42 : vector<4x8xf32>
    %44 = arith.truncf %43 : vector<4x8xf32> to vector<4x8xbf16>
    %45 = arith.truncf %28 : vector<8x32xf32> to vector<8x32xbf16>
    %cst_32 = arith.constant dense<0.000000e+00> : vector<4x32xf32>
    %46 = tpu.matmul %44, %45, %cst_32 {dimension_numbers = #tpu.dot_dimension_numbers<[1], [0], [0], [1], [0, 0, 1, 1], [], []>} : vector<4x8xbf16>, vector<8x32xbf16>, vector<4x32xf32> -> vector<4x32xf32>
    %47 = vector.shape_cast %46 : vector<4x32xf32> to vector<1x1x4x32xf32>
    %48 = arith.truncf %47 : vector<1x1x4x32xf32> to vector<1x1x4x32xbf16>
    %c0_33 = arith.constant 0 : index
    %c0_34 = arith.constant 0 : index
    %c0_35 = arith.constant 0 : index
    %c0_36 = arith.constant 0 : index
    %49 = vector.load %arg11[%c0_33, %c0_34, %c0_35, %c0_36] : memref<1x1x4x32xbf16, #tpu.memory_space<vmem>>, vector<1x1x4x32xbf16>
    tpu.vector_store %arg11[%c0_33, %c0_34, %c0_35, %c0_36], %48 {strides = array<i32>} : memref<1x1x4x32xbf16, #tpu.memory_space<vmem>>, vector<1x1x4x32xbf16>,
    return
  }
  func.func @transform_0(%arg0: i32, %arg1: i32) -> (i32, i32, i32) {
    %c0_i32 = arith.constant 0 : i32
    %c0_i32_0 = arith.constant 0 : i32
    %c0_i32_1 = arith.constant 0 : i32
    return %arg0, %c0_i32, %c0_i32_0 : i32, i32, i32
  }
  func.func @transform_1(%arg0: i32, %arg1: i32) -> (i32, i32, i32) {
    %c0_i32 = arith.constant 0 : i32
    %c0_i32_0 = arith.constant 0 : i32
    %c0_i32_1 = arith.constant 0 : i32
    return %arg0, %c0_i32, %c0_i32_0 : i32, i32, i32
  }
  func.func @transform_2(%arg0: i32, %arg1: i32) -> (i32, i32, i32) {
    %c0_i32 = arith.constant 0 : i32
    %c0_i32_0 = arith.constant 0 : i32
    %c0_i32_1 = arith.constant 0 : i32
    return %arg1, %c0_i32, %c0_i32_0 : i32, i32, i32
  }
  func.func @transform_3(%arg0: i32, %arg1: i32) -> (i32, i32, i32) {
    %c0_i32 = arith.constant 0 : i32
    %c0_i32_0 = arith.constant 0 : i32
    %c0_i32_1 = arith.constant 0 : i32
    return %arg1, %c0_i32, %c0_i32_0 : i32, i32, i32
  }
  func.func @transform_4(%arg0: i32, %arg1: i32) -> (i32, i32, i32) {
    %c0_i32 = arith.constant 0 : i32
    %c0_i32_0 = arith.constant 0 : i32
    %c0_i32_1 = arith.constant 0 : i32
    return %arg1, %c0_i32, %c0_i32_0 : i32, i32, i32
  }
  func.func @transform_5(%arg0: i32, %arg1: i32) -> (i32, i32, i32) {
    %c0_i32 = arith.constant 0 : i32
    %c0_i32_0 = arith.constant 0 : i32
    %c0_i32_1 = arith.constant 0 : i32
    return %arg1, %c0_i32, %c0_i32_0 : i32, i32, i32
  }
  func.func @transform_6(%arg0: i32, %arg1: i32) -> (i32, i32, i32) {
    %c0_i32 = arith.constant 0 : i32
    %c0_i32_0 = arith.constant 0 : i32
    %c0_i32_1 = arith.constant 0 : i32
    return %arg1, %c0_i32, %c0_i32_0 : i32, i32, i32
  }
  func.func @transform_7(%arg0: i32, %arg1: i32) -> (i32, i32, i32) {
    %c0_i32 = arith.constant 0 : i32
    %c0_i32_0 = arith.constant 0 : i32
    %c0_i32_1 = arith.constant 0 : i32
    return %arg1, %c0_i32, %c0_i32_0 : i32, i32, i32
  }
  func.func @transform_8(%arg0: i32, %arg1: i32) -> (i32, i32, i32) {
    %c0_i32 = arith.constant 0 : i32
    %c0_i32_0 = arith.constant 0 : i32
    %c0_i32_1 = arith.constant 0 : i32
    return %arg0, %c0_i32, %c0_i32_0 : i32, i32, i32
  }
  func.func @transform_9(%arg0: i32, %arg1: i32) -> (i32, i32, i32, i32) {
    %c0_i32 = arith.constant 0 : i32
    %c0_i32_0 = arith.constant 0 : i32
    %c0_i32_1 = arith.constant 0 : i32
    return %arg0, %arg1, %c0_i32, %c0_i32_0 : i32, i32, i32, i32
  }
}

module attributes {stable_mosaic.version = 11 : i64} {
  func.func @_linear_kernel(%arg0: i32, %arg1: i32, %arg2: memref<8x32xbf16, #tpu.memory_space<vmem>>, %arg3: memref<32x32xbf16, #tpu.memory_space<vmem>>, %arg4: memref<1x32xf32, #tpu.memory_space<vmem>>, %arg5: memref<8x32xbf16, #tpu.memory_space<vmem>>) attributes {dimension_semantics = [#tpu.dimension_semantics<parallel>, #tpu.dimension_semantics<parallel>], iteration_bounds = array<i64: 1, 1>, scalar_prefetch = 0 : i64, scratch_operands = 0 : i64, tpu.core_type = #tpu.core_type<tc>, window_params = [{transform_indices = @transform_0, window_bounds = array<i64: 8, 32>}, {transform_indices = @transform_1, window_bounds = array<i64: 32, 32>}, {transform_indices = @transform_2, window_bounds = array<i64: 1, 32>}, {transform_indices = @transform_3, window_bounds = array<i64: 8, 32>}]} {
    %c0 = arith.constant 0 : index
    %c0_0 = arith.constant 0 : index
    %0 = vector.load %arg2[%c0, %c0_0] : memref<8x32xbf16, #tpu.memory_space<vmem>>, vector<8x32xbf16>
    %c0_1 = arith.constant 0 : index
    %c0_2 = arith.constant 0 : index
    %1 = vector.load %arg3[%c0_1, %c0_2] : memref<32x32xbf16, #tpu.memory_space<vmem>>, vector<32x32xbf16>
    %cst = arith.constant dense<0.000000e+00> : vector<8x32xf32>
    %2 = tpu.matmul %0, %1, %cst {dimension_numbers = #tpu.dot_dimension_numbers<[1], [0], [0], [1], [0, 0, 1, 1], [], []>} : vector<8x32xbf16>, vector<32x32xbf16>, vector<8x32xf32> -> vector<8x32xf32>
    %c0_3 = arith.constant 0 : index
    %c0_4 = arith.constant 0 : index
    %3 = vector.load %arg4[%c0_3, %c0_4] : memref<1x32xf32, #tpu.memory_space<vmem>>, vector<1x32xf32>
    %4 = vector.broadcast %3 : vector<1x32xf32> to vector<8x32xf32>
    %5 = arith.addf %2, %4 : vector<8x32xf32>
    %6 = arith.truncf %5 : vector<8x32xf32> to vector<8x32xbf16>
    %c0_5 = arith.constant 0 : index
    %c0_6 = arith.constant 0 : index
    %7 = vector.load %arg5[%c0_5, %c0_6] : memref<8x32xbf16, #tpu.memory_space<vmem>>, vector<8x32xbf16>
    tpu.vector_store %arg5[%c0_5, %c0_6], %6 {strides = array<i32>} : memref<8x32xbf16, #tpu.memory_space<vmem>>, vector<8x32xbf16>,
    return
  }
  func.func @transform_0(%arg0: i32, %arg1: i32) -> (i32, i32) {
    %c0_i32 = arith.constant 0 : i32
    %c0_i32_0 = arith.constant 0 : i32
    return %arg0, %c0_i32 : i32, i32
  }
  func.func @transform_1(%arg0: i32, %arg1: i32) -> (i32, i32) {
    %c0_i32 = arith.constant 0 : i32
    %c0_i32_0 = arith.constant 0 : i32
    return %c0_i32, %arg1 : i32, i32
  }
  func.func @transform_2(%arg0: i32, %arg1: i32) -> (i32, i32) {
    %c0_i32 = arith.constant 0 : i32
    %c0_i32_0 = arith.constant 0 : i32
    return %c0_i32, %arg1 : i32, i32
  }
  func.func @transform_3(%arg0: i32, %arg1: i32) -> (i32, i32) {
    %c0_i32 = arith.constant 0 : i32
    return %arg0, %arg1 : i32, i32
  }
}

module attributes {stable_mosaic.version = 11 : i64} {
  func.func @_cross_attn_kernel(%arg0: i32, %arg1: i32, %arg2: memref<1x8x32xbf16, #tpu.memory_space<vmem>>, %arg3: memref<1x4x32xbf16, #tpu.memory_space<vmem>>, %arg4: memref<1x32x16xbf16, #tpu.memory_space<vmem>>, %arg5: memref<1x32x16xbf16, #tpu.memory_space<vmem>>, %arg6: memref<1x32x16xbf16, #tpu.memory_space<vmem>>, %arg7: memref<1x1x16xf32, #tpu.memory_space<vmem>>, %arg8: memref<1x1x16xf32, #tpu.memory_space<vmem>>, %arg9: memref<1x1x16xf32, #tpu.memory_space<vmem>>, %arg10: memref<1x1x4xf32, #tpu.memory_space<vmem>>, %arg11: memref<1x1x8x16xbf16, #tpu.memory_space<vmem>>) attributes {dimension_semantics = [#tpu.dimension_semantics<parallel>, #tpu.dimension_semantics<parallel>], iteration_bounds = array<i64: 2, 2>, scalar_prefetch = 0 : i64, scratch_operands = 0 : i64, tpu.core_type = #tpu.core_type<tc>, window_params = [{transform_indices = @transform_0, window_bounds = array<i64: 1, 8, 32>}, {transform_indices = @transform_1, window_bounds = array<i64: 1, 4, 32>}, {transform_indices = @transform_2, window_bounds = array<i64: 1, 32, 16>}, {transform_indices = @transform_3, window_bounds = array<i64: 1, 32, 16>}, {transform_indices = @transform_4, window_bounds = array<i64: 1, 32, 16>}, {transform_indices = @transform_5, window_bounds = array<i64: 1, 1, 16>}, {transform_indices = @transform_6, window_bounds = array<i64: 1, 1, 16>}, {transform_indices = @transform_7, window_bounds = array<i64: 1, 1, 16>}, {transform_indices = @transform_8, window_bounds = array<i64: 1, 1, 4>}, {transform_indices = @transform_9, window_bounds = array<i64: 1, 1, 8, 16>}]} {
    %c0 = arith.constant 0 : index
    %c0_0 = arith.constant 0 : index
    %c0_1 = arith.constant 0 : index
    %0 = vector.load %arg2[%c0, %c0_0, %c0_1] : memref<1x8x32xbf16, #tpu.memory_space<vmem>>, vector<1x8x32xbf16>
    %1 = vector.shape_cast %0 : vector<1x8x32xbf16> to vector<8x32xbf16>
    %c0_2 = arith.constant 0 : index
    %c0_3 = arith.constant 0 : index
    %c0_4 = arith.constant 0 : index
    %2 = vector.load %arg3[%c0_2, %c0_3, %c0_4] : memref<1x4x32xbf16, #tpu.memory_space<vmem>>, vector<1x4x32xbf16>
    %3 = vector.shape_cast %2 : vector<1x4x32xbf16> to vector<4x32xbf16>
    %c0_5 = arith.constant 0 : index
    %c0_6 = arith.constant 0 : index
    %c0_7 = arith.constant 0 : index
    %4 = vector.load %arg4[%c0_5, %c0_6, %c0_7] : memref<1x32x16xbf16, #tpu.memory_space<vmem>>, vector<1x32x16xbf16>
    %5 = vector.shape_cast %4 : vector<1x32x16xbf16> to vector<32x16xbf16>
    %c0_8 = arith.constant 0 : index
    %c0_9 = arith.constant 0 : index
    %c0_10 = arith.constant 0 : index
    %6 = vector.load %arg5[%c0_8, %c0_9, %c0_10] : memref<1x32x16xbf16, #tpu.memory_space<vmem>>, vector<1x32x16xbf16>
    %7 = vector.shape_cast %6 : vector<1x32x16xbf16> to vector<32x16xbf16>
    %c0_11 = arith.constant 0 : index
    %c0_12 = arith.constant 0 : index
    %c0_13 = arith.constant 0 : index
    %8 = vector.load %arg6[%c0_11, %c0_12, %c0_13] : memref<1x32x16xbf16, #tpu.memory_space<vmem>>, vector<1x32x16xbf16>
    %9 = vector.shape_cast %8 : vector<1x32x16xbf16> to vector<32x16xbf16>
    %c0_14 = arith.constant 0 : index
    %c0_15 = arith.constant 0 : index
    %c0_16 = arith.constant 0 : index
    %10 = vector.load %arg7[%c0_14, %c0_15, %c0_16] : memref<1x1x16xf32, #tpu.memory_space<vmem>>, vector<1x1x16xf32>
    %11 = vector.shape_cast %10 : vector<1x1x16xf32> to vector<1x16xf32>
    %c0_17 = arith.constant 0 : index
    %c0_18 = arith.constant 0 : index
    %c0_19 = arith.constant 0 : index
    %12 = vector.load %arg8[%c0_17, %c0_18, %c0_19] : memref<1x1x16xf32, #tpu.memory_space<vmem>>, vector<1x1x16xf32>
    %13 = vector.shape_cast %12 : vector<1x1x16xf32> to vector<1x16xf32>
    %c0_20 = arith.constant 0 : index
    %c0_21 = arith.constant 0 : index
    %c0_22 = arith.constant 0 : index
    %14 = vector.load %arg9[%c0_20, %c0_21, %c0_22] : memref<1x1x16xf32, #tpu.memory_space<vmem>>, vector<1x1x16xf32>
    %15 = vector.shape_cast %14 : vector<1x1x16xf32> to vector<1x16xf32>
    %c0_23 = arith.constant 0 : index
    %c0_24 = arith.constant 0 : index
    %c0_25 = arith.constant 0 : index
    %16 = vector.load %arg10[%c0_23, %c0_24, %c0_25] : memref<1x1x4xf32, #tpu.memory_space<vmem>>, vector<1x1x4xf32>
    %17 = vector.shape_cast %16 : vector<1x1x4xf32> to vector<1x4xf32>
    %cst = arith.constant dense<0.000000e+00> : vector<8x16xf32>
    %18 = tpu.matmul %1, %5, %cst {dimension_numbers = #tpu.dot_dimension_numbers<[1], [0], [0], [1], [0, 0, 1, 1], [], []>} : vector<8x32xbf16>, vector<32x16xbf16>, vector<8x16xf32> -> vector<8x16xf32>
    %19 = vector.broadcast %11 : vector<1x16xf32> to vector<8x16xf32>
    %20 = arith.addf %18, %19 : vector<8x16xf32>
    %cst_26 = arith.constant 2.500000e-01 : f32
    %21 = vector.broadcast %cst_26 : f32 to vector<8x16xf32>
    %22 = arith.mulf %20, %21 : vector<8x16xf32>
    %cst_27 = arith.constant dense<0.000000e+00> : vector<4x16xf32>
    %23 = tpu.matmul %3, %7, %cst_27 {dimension_numbers = #tpu.dot_dimension_numbers<[1], [0], [0], [1], [0, 0, 1, 1], [], []>} : vector<4x32xbf16>, vector<32x16xbf16>, vector<4x16xf32> -> vector<4x16xf32>
    %24 = vector.broadcast %13 : vector<1x16xf32> to vector<4x16xf32>
    %25 = arith.addf %23, %24 : vector<4x16xf32>
    %cst_28 = arith.constant dense<0.000000e+00> : vector<4x16xf32>
    %26 = tpu.matmul %3, %9, %cst_28 {dimension_numbers = #tpu.dot_dimension_numbers<[1], [0], [0], [1], [0, 0, 1, 1], [], []>} : vector<4x32xbf16>, vector<32x16xbf16>, vector<4x16xf32> -> vector<4x16xf32>
    %27 = vector.broadcast %15 : vector<1x16xf32> to vector<4x16xf32>
    %28 = arith.addf %26, %27 : vector<4x16xf32>
    %29 = arith.truncf %22 : vector<8x16xf32> to vector<8x16xbf16>
    %30 = arith.truncf %25 : vector<4x16xf32> to vector<4x16xbf16>
    %cst_29 = arith.constant dense<0.000000e+00> : vector<8x4xf32>
    %31 = tpu.matmul %29, %30, %cst_29 {dimension_numbers = #tpu.dot_dimension_numbers<[1], [1], [0], [0], [0, 0, 1, 0], [], []>} : vector<8x16xbf16>, vector<4x16xbf16>, vector<8x4xf32> -> vector<8x4xf32>
    %32 = vector.broadcast %17 : vector<1x4xf32> to vector<8x4xf32>
    %33 = arith.addf %31, %32 : vector<8x4xf32>
    %cst_30 = arith.constant dense<0xFF800000> : vector<8xf32>
    %34 = vector.multi_reduction <maximumf>, %33, %cst_30 [1] : vector<8x4xf32> to vector<8xf32>
    %35 = vector.shape_cast %34 : vector<8xf32> to vector<8x1xf32>
    %36 = vector.broadcast %35 : vector<8x1xf32> to vector<8x4xf32>
    %37 = arith.subf %33, %36 : vector<8x4xf32>
    %38 = math.exp %37 : vector<8x4xf32>
    %cst_31 = arith.constant dense<0.000000e+00> : vector<8xf32>
    %39 = vector.multi_reduction <add>, %38, %cst_31 [1] : vector<8x4xf32> to vector<8xf32>
    %40 = vector.shape_cast %39 : vector<8xf32> to vector<8x1xf32>
    %41 = tpu.reciprocal %40 {approx = true} : vector<8x1xf32> -> vector<8x1xf32>
    %42 = vector.broadcast %41 : vector<8x1xf32> to vector<8x4xf32>
    %43 = arith.mulf %38, %42 : vector<8x4xf32>
    %44 = arith.truncf %43 : vector<8x4xf32> to vector<8x4xbf16>
    %45 = arith.truncf %28 : vector<4x16xf32> to vector<4x16xbf16>
    %cst_32 = arith.constant dense<0.000000e+00> : vector<8x16xf32>
    %46 = tpu.matmul %44, %45, %cst_32 {dimension_numbers = #tpu.dot_dimension_numbers<[1], [0], [0], [1], [0, 0, 1, 1], [], []>} : vector<8x4xbf16>, vector<4x16xbf16>, vector<8x16xf32> -> vector<8x16xf32>
    %47 = vector.shape_cast %46 : vector<8x16xf32> to vector<1x1x8x16xf32>
    %48 = arith.truncf %47 : vector<1x1x8x16xf32> to vector<1x1x8x16xbf16>
    %c0_33 = arith.constant 0 : index
    %c0_34 = arith.constant 0 : index
    %c0_35 = arith.constant 0 : index
    %c0_36 = arith.constant 0 : index
    %49 = vector.load %arg11[%c0_33, %c0_34, %c0_35, %c0_36] : memref<1x1x8x16xbf16, #tpu.memory_space<vmem>>, vector<1x1x8x16xbf16>
    tpu.vector_store %arg11[%c0_33, %c0_34, %c0_35, %c0_36], %48 {strides = array<i32>} : memref<1x1x8x16xbf16, #tpu.memory_space<vmem>>, vector<1x1x8x16xbf16>,
    return
  }
  func.func @transform_0(%arg0: i32, %arg1: i32) -> (i32, i32, i32) {
    %c0_i32 = arith.constant 0 : i32
    %c0_i32_0 = arith.constant 0 : i32
    %c0_i32_1 = arith.constant 0 : i32
    return %arg0, %c0_i32, %c0_i32_0 : i32, i32, i32
  }
  func.func @transform_1(%arg0: i32, %arg1: i32) -> (i32, i32, i32) {
    %c0_i32 = arith.constant 0 : i32
    %c0_i32_0 = arith.constant 0 : i32
    %c0_i32_1 = arith.constant 0 : i32
    return %arg0, %c0_i32, %c0_i32_0 : i32, i32, i32
  }
  func.func @transform_2(%arg0: i32, %arg1: i32) -> (i32, i32, i32) {
    %c0_i32 = arith.constant 0 : i32
    %c0_i32_0 = arith.constant 0 : i32
    %c0_i32_1 = arith.constant 0 : i32
    return %arg1, %c0_i32, %c0_i32_0 : i32, i32, i32
  }
  func.func @transform_3(%arg0: i32, %arg1: i32) -> (i32, i32, i32) {
    %c0_i32 = arith.constant 0 : i32
    %c0_i32_0 = arith.constant 0 : i32
    %c0_i32_1 = arith.constant 0 : i32
    return %arg1, %c0_i32, %c0_i32_0 : i32, i32, i32
  }
  func.func @transform_4(%arg0: i32, %arg1: i32) -> (i32, i32, i32) {
    %c0_i32 = arith.constant 0 : i32
    %c0_i32_0 = arith.constant 0 : i32
    %c0_i32_1 = arith.constant 0 : i32
    return %arg1, %c0_i32, %c0_i32_0 : i32, i32, i32
  }
  func.func @transform_5(%arg0: i32, %arg1: i32) -> (i32, i32, i32) {
    %c0_i32 = arith.constant 0 : i32
    %c0_i32_0 = arith.constant 0 : i32
    %c0_i32_1 = arith.constant 0 : i32
    return %arg1, %c0_i32, %c0_i32_0 : i32, i32, i32
  }
  func.func @transform_6(%arg0: i32, %arg1: i32) -> (i32, i32, i32) {
    %c0_i32 = arith.constant 0 : i32
    %c0_i32_0 = arith.constant 0 : i32
    %c0_i32_1 = arith.constant 0 : i32
    return %arg1, %c0_i32, %c0_i32_0 : i32, i32, i32
  }
  func.func @transform_7(%arg0: i32, %arg1: i32) -> (i32, i32, i32) {
    %c0_i32 = arith.constant 0 : i32
    %c0_i32_0 = arith.constant 0 : i32
    %c0_i32_1 = arith.constant 0 : i32
    return %arg1, %c0_i32, %c0_i32_0 : i32, i32, i32
  }
  func.func @transform_8(%arg0: i32, %arg1: i32) -> (i32, i32, i32) {
    %c0_i32 = arith.constant 0 : i32
    %c0_i32_0 = arith.constant 0 : i32
    %c0_i32_1 = arith.constant 0 : i32
    return %arg0, %c0_i32, %c0_i32_0 : i32, i32, i32
  }
  func.func @transform_9(%arg0: i32, %arg1: i32) -> (i32, i32, i32, i32) {
    %c0_i32 = arith.constant 0 : i32
    %c0_i32_0 = arith.constant 0 : i32
    %c0_i32_1 = arith.constant 0 : i32
    return %arg0, %arg1, %c0_i32, %c0_i32_0 : i32, i32, i32, i32
  }
}

</mosaic_0001>

<bundles_post_ra>
// kernel: _lambda_.20
= control target key start
LH: loop header
LB: loop body
LE: loop exit
PB: predicated region body
PF: predicated region fallthrough
CT: control target
= control target key end

     0   :  { %s1129_s27 = smov 0   ;;  %s1131_s28 = smov 0   ;;  %s1228_s0 = inlined_call_operand.vmem [shape: bf16[2,8,32], index: 0, kind: input, shape index: {}]   ;;  %s1229_s1 = inlined_call_operand.vmem [shape: bf16[2,32,16], index: 1, kind: input, shape index: {}]   ;;  %s1230_s2 = inlined_call_operand.vmem [shape: bf16[2,32,16], index: 2, kind: input, shape index: {}]   ;;  %s1231_s3 = inlined_call_operand.vmem [shape: bf16[2,32,16], index: 3, kind: input, shape index: {}]   ;;  %s1232_s4 = inlined_call_operand.vmem [shape: f32[2,1,16], index: 4, kind: input, shape index: {}, may-alias: {4,5,6}]   ;;  %s1233_s5 = inlined_call_operand.vmem [shape: f32[2,1,16], index: 5, kind: input, shape index: {}, may-alias: {4,5,6}]   ;;  %s1234_s6 = inlined_call_operand.vmem [shape: f32[2,1,16], index: 6, kind: input, shape index: {}, may-alias: {4,5,6}]   ;;  %s1235_s7 = inlined_call_operand.vmem [shape: f32[2,1,8], index: 7, kind: input, shape index: {}]   ;;  %s1236_s8 = inlined_call_operand.vmem [shape: bf16[2,2,8,16], index: 8, kind: output, shape index: {}]  }
   0x1   :  { %s1133_s29 = smov 0   ;;  %s1135_s30 = smov 0  }
   0x2   :  { %s1137_s9 = smov 0  }
   0x3 LB: > { %s27_s10 = sadd.s32 1, %s1072_s29  ;;  %s30_s11 = sadd.s32 1, %s1076_s30  ;;  %s1080_s9 = sphi %s1137_s9, %s18_s9   ;;  %s1076_s30 = sphi %s1135_s30, %s1240_s30   ;;  %s1072_s29 = sphi %s1133_s29, %s1239_s29   ;;  %s1068_s28 = sphi %s1131_s28, %s1238_s28   ;;  %s1064_s27 = sphi %s1129_s27, %s1237_s27  }
   0x4   : > { %p28_p0 = scmp.ge.s32.totalorder %s27_s10, 2  ;;  %p911_p1 = scmp.ge.s32.totalorder %s1080_s9, 1 }
   0x5   : > { %p337_p2 = scmp.lt.s32.totalorder %s1080_s9, 5 }
   0x6   : > { %s1242_s10 = smov (%p28_p0, %s27_s10), 0  ;;  %s1244_s11 = smov (!%p28_p0, %s30_s11), %s1076_s30 }
   0x7   : > { %p338_p3 = pnand %p911_p1, %p337_p2  ;;  %p32_p4 = scmp.ge.s32.totalorder %s1244_s11, 2 }
   0x8   : > { %p404_p5 = scmp.lt.s32.totalorder (!%p338_p3), %s1064_s27, 1  ;;  %p400_p6 = scmp.lt.s32.totalorder (!%p338_p3), %s1068_s28, 1  ;;  %v1082_v0 = vmov (!%p338_p3), 0.0   ;;  %vm1083_vm0 = vmmov (!%p338_p3), 0   ;;  %vm475_vm1 = vcmask (!%p338_p3), 261120   ;;  %vm644_vm2 = vcmask (!%p338_p3), 130048  }
   0x9   : > { %s1246_s11 = smov (%p32_p4, %s1244_s11), 0  ;;  %341 = sbr.rel (%p338_p3) target bundleno = 996 (0x3e4), region = 52 }
   0xa   : > { %962 = vmatprep.subr.bf16.mxu1 (!%p338_p3), %v1082_v0  ;;  %954 = vmatprep.subr.bf16.mxu0 (!%p338_p3), %v1082_v0  ;;  %vm691_vm3 = vcmask (!%p338_p3), 64512   ;;  %vm708_vm4 = vcmask (!%p338_p3), 1043456   ;;  %vm753_vm5 = vcmask (!%p338_p3), 125952  }
   0xb   : > { %966 = vmatprep.mubr.msk.bf16.mxu1 (!%p338_p3), %vm1083_vm0, %v1082_v0  ;;  %958 = vmatprep.mubr.msk.bf16.mxu0 (!%p338_p3), %vm1083_vm0, %v1082_v0 }
  0x10   : > { %s1248_s27 = smov (!%p404_p5, %s1064_s27), 1  ;;  %s1250_s28 = smov (!%p400_p6, %s1068_s28), 1 }
  0x11   : > { %s938_s12 = sshll.u32 %s1248_s27, 4  ;;  %s912_s19 = sshll.u32 %s1250_s28, 2 }
  0x12   : > { %s413_s15 = scalar_lea.vmem %s1230_s2, %s938_s12  ;;  %s408_s18 = scalar_lea.vmem %s1229_s1, %s938_s12 }
  0x13   : > { %v1032_v1 = vld [vmem:[%s413_s15] sm:$0xff]   ;;  %v1034_v3 = vld [vmem:[%s413_s15 + $0x8] sm:$0xff]   ;;  %s1176_s22 = scalar_lea.vmem %s1231_s3, %s938_s12  ;;  %s403_s25 = scalar_lea.vmem %s1228_s0, %s912_s19 }
  0x14   : > { %v1033_v2 = vld [vmem:[%s408_s18] sm:$0xff]   ;;  %963 = vmatpush3.bf16.msra.mxu1 %v1032_v1  ;;  %v1035_v4 = vld [vmem:[%s408_s18 + $0x8] sm:$0xff]   ;;  %s424_s13 = scalar_lea.vmem %s1233_s5, %s1248_s27  ;;  %s421_s16 = scalar_lea.vmem %s1232_s4, %s1248_s27 }
  0x15   : > { %964 = vmatprep.subr.bf16.mxu1 %v1082_v0  ;;  %955 = vmatpush3.bf16.msra.mxu0 %v1033_v2  ;;  %v440_v5 = vld [vmem:[%s403_s25] sm:$0xf]  ;;  %v1037_v23 = vld [vmem:[%s1176_s22 + $0x8] sm:$0xff]   ;;  %s430_s19 = scalar_lea.vmem %s1235_s7, %s1250_s28  ;;  %s919_s23 = sshll.u32 %s1250_s28, 1 }
  0x16   : > { %956 = vmatprep.subr.bf16.mxu0 %v1082_v0  ;;  %v925_v6 = vld [vmem:[%s424_s13] ss:$0 sm:$0xff]  ;;  %s436_s24 = sadd.s32 %s919_s23, %s1248_s27 }
  0x17   : > { %v921_v7 = vld [vmem:[%s421_s16] ss:$0 sm:$0xff]  ;;  %s920_s25 = sshll.u32 %s436_s24, 2 }
  0x18   : > { %965 = vmatpush3.bf16.msra.mxu1 %v1034_v3  ;;  %v1036_v22 = vld [vmem:[%s1176_s22] sm:$0xff]   ;;  %s427_s22 = scalar_lea.vmem %s1234_s6, %s1248_s27  ;;  %s438_s13 = scalar_lea.vmem %s1236_s8, %s920_s25 }
  0x19   : > { %957 = vmatpush3.bf16.msra.mxu0 %v1035_v4  ;;  %978 = vmatprep.subr.bf16.mxu1 %v1082_v0  ;;  %v933_v24 = vld [vmem:[%s430_s19] ss:$0 sm:$0xff] }
  0x1a   : > { %970 = vmatprep.subr.bf16.mxu0 %v1082_v0  ;;  %v929_v39 = vld [vmem:[%s427_s22] ss:$0 sm:$0xff] }
  0x1b   : > { %967 = vmatmul.mubr.msk.bf16.vlgmr.msra.gmra.mrb[0].mxu1 %vm475_vm1, %v440_v5 }
  0x1c   : > { %959 = vmatmul.mubr.msk.bf16.vlgmr.msra.gmra.mrb[0].mxu0 %vm475_vm1, %v440_v5  ;;  %980 = vmatprep.mubr.msk.bf16.mxu1 %vm1083_vm0, %v1082_v0 }
  0x1d   : > { %974 = vmatprep.mubr.msk.bf16.mxu0 %vm1083_vm0, %v1082_v0  ;;  %971 = vmatpush3.bf16.msra.mxu0 %v1036_v22 }
  0x1e   : > { %972 = vmatprep.subr.bf16.mxu0 %v1082_v0 }
  0x21   : > { %973 = vmatpush3.bf16.msra.mxu0 %v1037_v23 }
  0x22   : > { %984 = vmatprep.subr.bf16.mxu0 %v1082_v0 }
  0x24   : > { %975 = vmatmul.mubr.msk.bf16.vlgmr.msra.gmra.mrb[4].mxu0 %vm475_vm1, %v440_v5 }
  0x25   : > { %986 = vmatprep.mubr.msk.bf16.mxu0 %vm1083_vm0, %v1082_v0 }
  0xee   : > { %v572_v8 = vpop.f32.mrb[0].mxu1 }
  0xef   : > { %v573_v9 = vadd.f32 %v925_v6, %v572_v8  ;;  %v968_v10 = vpop.f32.mrb[1].mxu1  ;;  %v513_v11 = vpop.f32.mrb[0].mxu0 }
  0xf0   : > { %v575_v12 = vpop.f32.mrb[2].mxu1  ;;  %v514_v13 = vadd.f32 %v921_v7, %v513_v11  ;;  %v960_v14 = vpop.f32.mrb[1].mxu0 }
  0xf1   : > { %v637_v15 = vpack.c.bf16 %v573_v9, %v573_v9  ;;  %v969_v16 = vpop.f32.mrb[3].mxu1  ;;  %v516_v17 = vpop.f32.mrb[2].mxu0 }
  0xf2   : > { %v961_v18 = vpop.f32.mrb[3].mxu0  ;;  %v519_v20 = vmul.f32 0.25, %v514_v13 }
  0xf3   : > { %v649_v19 = vsel %vm644_vm2, %v637_v15, 0 }
  0xf4   : > { %979 = vmatpush3.bf16.xpose.msra.mxu1 %v649_v19  ;;  %v636_v21 = vpack.c.bf16 %v519_v20, %v519_v20 }
  0xf7   : > { %v630_v36 = vpop.f32.mrb[4].mxu0 }
  0xf8   : > { %v976_v37 = vpop.f32.mrb[5].mxu0  ;;  %v631_v41 = vadd.f32 %v929_v39, %v630_v36 }
  0xf9   : > { %v633_v38 = vpop.f32.mrb[6].mxu0 }
  0xfa   : > { %v977_v40 = vpop.f32.mrb[7].mxu0  ;;  %v704_v42 = vpack.c.bf16 %v631_v41, %v631_v41 }
  0xfb   : > { %981 = vmatmul.mubr.msk.bf16.vlgmr.msra.gmra.mrb[4].mxu1 %vm644_vm2, %v636_v21 }
  0xfc   : > { %v710_v43 = vsel %vm708_vm4, %v704_v42, 0 }
  0xfd   : > { %985 = vmatpush3.bf16.msra.mxu0 %v710_v43 }
 0x1ce   : > { %v685_v25 = vpop.f32.mrb[4].mxu1 }
 0x1cf   : > { %v686_v26 = vadd.f32 %v933_v24, %v685_v25  ;;  %v982_v27 = vpop.f32.mrb[5].mxu1 }
 0x1d0   : > { %v688_v28 = vpop.f32.mrb[6].mxu1 }
 0x1d1   : > { %v983_v29 = vpop.f32.mrb[7].mxu1  ;;  %v692_v30 = vsel %vm691_vm3, %v686_v26, -inf }
 0x1d2   : > { %693 = vmax.xlane.f32.xlu0 %v692_v30 }
 0x25f   : > { %v694_v31 = vpop.xlane.xlu0 %693 }
 0x260   : > { %v695_v32 = vsub.f32 %v686_v26, %v694_v31 }
 0x262   : > { %v696_v33 = vmul.f32 1.442695, %v695_v32 }
 0x264   : > { %1038 = vpow2.f32 %v696_v33 }
 0x26e   : > { %v1039_v34 = vpop.eup %1038 }
 0x26f   : > { %v698_v35 = vsel %vm691_vm3, %v1039_v34, 0.0 }
 0x270   : > { %699 = vadd.xlane.f32.xlu0 %v698_v35 }
 0x2fd   : > { %v700_v44 = vpop.xlane.xlu0 %699 }
 0x2fe   : > { %1040 = vrcp.f32 %v700_v44 }
 0x308   : > { %v1041_v45 = vpop.eup %1040 }
 0x309   : > { %v702_v46 = vmul.f32 %v1041_v45, %v1039_v34 }
 0x30b   : > { %v703_v47 = vpack.c.bf16 %v702_v46, %v702_v46 }
 0x30d   : > { %987 = vmatmul.mubr.msk.bf16.vlgmr.msra.gmra.mrb[8].mxu0 %vm691_vm3, %v703_v47 }
 0x3e0   : > { %v746_v48 = vpop.f32.mrb[8].mxu0 }
 0x3e1   : > { %v752_v49 = vpack.c.bf16 %v746_v48, %v746_v48  ;;  %v988_v50 = vpop.f32.mrb[9].mxu0 }
 0x3e2   : > { %v749_v51 = vpop.f32.mrb[10].mxu0 }
 0x3e3   : > { %754 = vst.msk [vmem:[%s438_s13] sm:$0xf] %vm753_vm5, %v752_v49  ;;  %v989_v52 = vpop.f32.mrb[11].mxu0 }
 0x3e4 PF: > { %s18_s9 = sadd.s32 1, %s1080_s9   ;;  %s1237_s27 = smov %s1072_s29 }
 0x3e5   : > { %p15_p7 = scmp.ge.s32.totalorder %s18_s9, 6   ;;  %s1238_s28 = smov %s1076_s30 }
 0x3e6   : > { %s1239_s29 = smov %s1242_s10  ;;  %s1240_s30 = smov %s1246_s11 }
 0x3e7   :  { %17 = sbr.rel (!%p15_p7) target bundleno = 3 (0x3), region = 103 }

// kernel: _lambda_.22
= control target key start
LH: loop header
LB: loop body
LE: loop exit
PB: predicated region body
PF: predicated region fallthrough
CT: control target
= control target key end

     0   :  { %v144_v0 = vmov 0.0   ;;  %vm145_vm0 = vmmov 0   ;;  %vm45_vm1 = vcmask 261120   ;;  %vm108_vm2 = vcmask 519168   ;;  %s184_s1 = inlined_call_operand.vmem [shape: bf16[32,64], index: 1, kind: input, shape index: {}]   ;;  %s185_s0 = inlined_call_operand.vmem [shape: bf16[16,32], index: 0, kind: input, shape index: {}]   ;;  %s186_s2 = inlined_call_operand.vmem [shape: f32[1,64], index: 2, kind: input, shape index: {}]   ;;  %s187_s3 = inlined_call_operand.vmem [shape: bf16[16,64], index: 3, kind: output, shape index: {}]  }
   0x1   :  { %127 = vmatprep.subr.bf16.mxu0 %v144_v0  ;;  %v137_v1 = vld [vmem:[%s184_s1] sm:$0xff]   ;;  %131 = vmatprep.mubr.msk.bf16.mxu0 %vm145_vm0, %v144_v0  ;;  %v138_v2 = vld [vmem:[%s184_s1 + $0x8] sm:$0xff]  }
   0x2   :  { %128 = vmatpush3.bf16.msra.mxu0 %v137_v1  ;;  %v139_v3 = vld [vmem:[%s185_s0] sm:$0xff]  }
   0x3   :  { %129 = vmatprep.subr.bf16.mxu0 %v144_v0  ;;  %v115_v4 = vld [vmem:[%s186_s2] ss:$0 sm:$0xff] }
   0x6   :  { %130 = vmatpush3.bf16.msra.mxu0 %v138_v2 }
   0x9   :  { %132 = vmatmul.mubr.msk.bf16.vlgmr.msra.gmra.mrb[0].mxu0 %vm45_vm1, %v139_v3 }
  0xdc   :  { %v83_v5 = vpop.f32.mrb[0].mxu0 }
  0xdd   :  { %v84_v6 = vadd.f32 %v115_v4, %v83_v5  ;;  %v133_v7 = vpop.f32.mrb[1].mxu0 }
  0xde   :  { %v86_v8 = vpop.f32.mrb[2].mxu0 }
  0xdf   :  { %v92_v9 = vmul.f32 0.70710677, %v84_v6  ;;  %v87_v10 = vadd.f32 %v115_v4, %v86_v8  ;;  %v134_v11 = vpop.f32.mrb[3].mxu0  ;;  %v90_v14 = vmul.f32 0.5, %v84_v6 }
  0xe1   :  { %140 = verf.f32 %v92_v9  ;;  %v93_v12 = vmul.f32 0.70710677, %v87_v10  ;;  %v91_v18 = vmul.f32 0.5, %v87_v10 }
  0xe3   :  { %142 = verf.f32 %v93_v12 }
  0xeb   :  { %v141_v13 = vpop.eup %140 }
  0xec   :  { %v96_v15 = vadd.f32 1.0, %v141_v13 }
  0xed   :  { %v143_v16 = vpop.eup %142 }
  0xee   :  { %v98_v17 = vmul.f32 %v96_v15, %v90_v14  ;;  %v97_v19 = vadd.f32 1.0, %v143_v16 }
  0xf0   :  { %v122_v20 = vpack.c.bf16 %v98_v17, %v98_v17  ;;  %v99_v21 = vmul.f32 %v97_v19, %v91_v18 }
  0xf2   :  { %109 = vst.msk [vmem:[%s187_s3] sm:$0xf] %vm108_vm2, %v122_v20  ;;  %v123_v22 = vpack.c.bf16 %v99_v21, %v99_v21 }
  0xf4   :  { %110 = vst.msk [vmem:[%s187_s3 + $0x4] sm:$0xf] %vm108_vm2, %v123_v22 }

// kernel: _lambda_.21
= control target key start
LH: loop header
LB: loop body
LE: loop exit
PB: predicated region body
PF: predicated region fallthrough
CT: control target
= control target key end

     0   :  { %v200_v0 = vmov 0.0   ;;  %vm201_vm0 = vmmov 0   ;;  %vm54_vm1 = vcmask 261120   ;;  %vm158_vm2 = vcmask 257024   ;;  %s269_s1 = inlined_call_operand.vmem [shape: bf16[32,32], index: 1, kind: input, shape index: {}]   ;;  %s270_s0 = inlined_call_operand.vmem [shape: bf16[16,32], index: 0, kind: input, shape index: {}]   ;;  %s271_s3 = inlined_call_operand.vmem [shape: bf16[16,32], index: 3, kind: input, shape index: {}]   ;;  %s272_s2 = inlined_call_operand.vmem [shape: f32[1,32], index: 2, kind: input, shape index: {}, may-alias: {2,5}]   ;;  %s273_s4 = inlined_call_operand.vmem [shape: f32[1,32], index: 4, kind: input, shape index: {}]   ;;  %s274_s5 = inlined_call_operand.vmem [shape: f32[1,32], index: 5, kind: input, shape index: {}, may-alias: {2,5}]   ;;  %s275_s6 = inlined_call_operand.vmem [shape: bf16[16,32], index: 6, kind: output, shape index: {}]  }
   0x1   :  { %183 = vmatprep.subr.bf16.mxu0 %v200_v0  ;;  %v193_v1 = vld [vmem:[%s269_s1] sm:$0xff]   ;;  %187 = vmatprep.mubr.msk.bf16.mxu0 %vm201_vm0, %v200_v0  ;;  %v194_v2 = vld [vmem:[%s269_s1 + $0x8] sm:$0xff]  }
   0x2   :  { %184 = vmatpush3.bf16.msra.mxu0 %v193_v1  ;;  %v195_v3 = vld [vmem:[%s270_s0] sm:$0xff]  }
   0x3   :  { %185 = vmatprep.subr.bf16.mxu0 %v200_v0  ;;  %v177_v4 = vld [vmem:[%s271_s3] sm:$0xff]  }
   0x4   :  { %v165_v5 = vld [vmem:[%s272_s2] ss:$0 sm:$0xff]  ;;  %v178_v6 = vunpack.c.l.bf16 %v177_v4  ;;  %v179_v10 = vunpack.c.h.bf16 %v177_v4 }
   0x5   :  { %v170_v35 = vld [vmem:[%s273_s4] ss:$0 sm:$0xff] }
   0x6   :  { %186 = vmatpush3.bf16.msra.mxu0 %v194_v2  ;;  %v171_v37 = vld [vmem:[%s274_s5] ss:$0 sm:$0xff] }
   0x9   :  { %188 = vmatmul.mubr.msk.bf16.vlgmr.msra.gmra.mrb[0].mxu0 %vm54_vm1, %v195_v3 }
  0xdc   :  { %v92_v7 = vpop.f32.mrb[0].mxu0 }
  0xdd   :  { %v93_v8 = vadd.f32 %v165_v5, %v92_v7  ;;  %v189_v9 = vpop.f32.mrb[1].mxu0 }
  0xde   :  { %v95_v11 = vpop.f32.mrb[2].mxu0 }
  0xdf   :  { %v96_v12 = vadd.f32 %v165_v5, %v95_v11  ;;  %v190_v13 = vpop.f32.mrb[3].mxu0  ;;  %v103_v14 = vadd.f32 %v178_v6, %v93_v8 }
  0xe1   :  { %v105_v15 = vsel %vm54_vm1, %v103_v14, 0.0  ;;  %v104_v16 = vadd.f32 %v179_v10, %v96_v12 }
  0xe2   :  { %106 = vadd.xlane.f32.xlu0 %v105_v15 }
  0xe3   :  { %v108_v17 = vsel %vm54_vm1, %v104_v16, 0.0 }
  0xe6   :  { %109 = vadd.xlane.f32.xlu0 %v108_v17 }
 0x16f   :  { %v107_v18 = vpop.xlane.xlu0 %106 }
 0x170   :  { %v112_v19 = vmul.f32 0.03125, %v107_v18 }
 0x172   :  { %v114_v20 = vsub.f32 %v103_v14, %v112_v19 }
 0x173   :  { %v110_v21 = vpop.xlane.xlu0 %109 }
 0x174   :  { %v113_v22 = vmul.f32 0.03125, %v110_v21  ;;  %v116_v23 = vmul.f32 %v114_v20, %v114_v20 }
 0x176   :  { %v115_v24 = vsub.f32 %v104_v16, %v113_v22  ;;  %v118_v25 = vsel %vm54_vm1, %v116_v23, 0.0 }
 0x177   :  { %119 = vadd.xlane.f32.xlu1 %v118_v25 }
 0x178   :  { %v117_v26 = vmul.f32 %v115_v24, %v115_v24 }
 0x17a   :  { %v121_v27 = vsel %vm54_vm1, %v117_v26, 0.0 }
 0x17b   :  { %122 = vadd.xlane.f32.xlu1 %v121_v27 }
 0x204   :  { %v120_v28 = vpop.xlane.xlu1 %119 }
 0x205   :  { %v124_v29 = vmul.f32 0.03125, %v120_v28 }
 0x207   :  { %v126_v30 = vadd.f32 1e-12, %v124_v29 }
 0x208   :  { %v123_v31 = vpop.xlane.xlu1 %122 }
 0x209   :  { %196 = vrsqrt.f32 %v126_v30  ;;  %v125_v32 = vmul.f32 0.03125, %v123_v31 }
 0x20b   :  { %v127_v33 = vadd.f32 1e-12, %v125_v32 }
 0x20d   :  { %198 = vrsqrt.f32 %v127_v33 }
 0x213   :  { %v197_v34 = vpop.eup %196 }
 0x214   :  { %v130_v36 = vmul.f32 %v197_v34, %v114_v20 }
 0x216   :  { %v139_v38 = vmul.f32 %v170_v35, %v130_v36 }
 0x217   :  { %v199_v39 = vpop.eup %198 }
 0x218   :  { %v148_v40 = vadd.f32 %v171_v37, %v139_v38  ;;  %v131_v41 = vmul.f32 %v199_v39, %v115_v24 }
 0x21a   :  { %v174_v42 = vpack.c.bf16 %v148_v40, %v148_v40  ;;  %v140_v43 = vmul.f32 %v170_v35, %v131_v41 }
 0x21c   :  { %159 = vst.msk [vmem:[%s275_s6] sm:$0xf] %vm158_vm2, %v174_v42  ;;  %v149_v44 = vadd.f32 %v171_v37, %v140_v43 }
 0x21e   :  { %v175_v45 = vpack.c.bf16 %v149_v44, %v149_v44 }
 0x220   :  { %160 = vst.msk [vmem:[%s275_s6 + $0x4] sm:$0xf] %vm158_vm2, %v175_v45 }

// kernel: _lambda_.23
= control target key start
LH: loop header
LB: loop body
LE: loop exit
PB: predicated region body
PF: predicated region fallthrough
CT: control target
= control target key end

     0   :  { %v227_v0 = vmov 0.0   ;;  %vm228_vm0 = vmmov 0   ;;  %vm70_vm1 = vcmask 523264   ;;  %vm121_vm2 = vcmask 261120   ;;  %s301_s1 = inlined_call_operand.vmem [shape: bf16[64,32], index: 1, kind: input, shape index: {}]   ;;  %s302_s0 = inlined_call_operand.vmem [shape: bf16[16,64], index: 0, kind: input, shape index: {}]   ;;  %s303_s3 = inlined_call_operand.vmem [shape: bf16[16,32], index: 3, kind: input, shape index: {}]   ;;  %s304_s2 = inlined_call_operand.vmem [shape: f32[1,32], index: 2, kind: input, shape index: {}, may-alias: {2,5}]   ;;  %s305_s4 = inlined_call_operand.vmem [shape: f32[1,32], index: 4, kind: input, shape index: {}]   ;;  %s306_s5 = inlined_call_operand.vmem [shape: f32[1,32], index: 5, kind: input, shape index: {}, may-alias: {2,5}]   ;;  %s307_s6 = inlined_call_operand.vmem [shape: bf16[16,32], index: 6, kind: output, shape index: {}]  }
   0x1   :  { %204 = vmatprep.subr.bf16.mxu0 %v227_v0  ;;  %v218_v1 = vld [vmem:[%s301_s1] sm:$0xff]   ;;  %212 = vmatprep.mubr.msk.bf16.mxu0 %vm228_vm0, %v227_v0  ;;  %v219_v2 = vld [vmem:[%s301_s1 + $0x8] sm:$0xff]   ;;  %v220_v3 = vld [vmem:[%s301_s1 + $0x10] sm:$0xff]   ;;  %vm175_vm3 = vcmask 257024  }
   0x2   :  { %205 = vmatpush3.bf16.msra.mxu0 %v218_v1  ;;  %v221_v4 = vld [vmem:[%s301_s1 + $0x18] sm:$0xff]   ;;  %v222_v5 = vld [vmem:[%s302_s0] sm:$0xff]  }
   0x3   :  { %206 = vmatprep.subr.bf16.mxu0 %v227_v0  ;;  %v196_v6 = vld [vmem:[%s303_s3] sm:$0xff]  }
   0x4   :  { %v182_v7 = vld [vmem:[%s304_s2] ss:$0 sm:$0xff]  ;;  %v197_v8 = vunpack.c.l.bf16 %v196_v6  ;;  %v198_v12 = vunpack.c.h.bf16 %v196_v6 }
   0x5   :  { %v189_v37 = vld [vmem:[%s305_s4] ss:$0 sm:$0xff] }
   0x6   :  { %207 = vmatpush3.bf16.msra.mxu0 %v219_v2  ;;  %v190_v39 = vld [vmem:[%s306_s5] ss:$0 sm:$0xff] }
   0x7   :  { %208 = vmatprep.subr.bf16.mxu0 %v227_v0 }
   0xa   :  { %209 = vmatpush3.bf16.msra.mxu0 %v220_v3 }
   0xb   :  { %210 = vmatprep.subr.bf16.mxu0 %v227_v0 }
   0xe   :  { %211 = vmatpush3.bf16.msra.mxu0 %v221_v4 }
  0x11   :  { %213 = vmatmul.mubr.msk.bf16.vlgmr.msra.gmra.mrb[0].mxu0 %vm70_vm1, %v222_v5 }
  0xe4   :  { %v108_v9 = vpop.f32.mrb[0].mxu0 }
  0xe5   :  { %v109_v10 = vadd.f32 %v182_v7, %v108_v9  ;;  %v214_v11 = vpop.f32.mrb[1].mxu0 }
  0xe6   :  { %v111_v13 = vpop.f32.mrb[2].mxu0 }
  0xe7   :  { %v112_v14 = vadd.f32 %v182_v7, %v111_v13  ;;  %v215_v15 = vpop.f32.mrb[3].mxu0  ;;  %v119_v16 = vadd.f32 %v197_v8, %v109_v10 }
  0xe9   :  { %v122_v17 = vsel %vm121_vm2, %v119_v16, 0.0  ;;  %v120_v18 = vadd.f32 %v198_v12, %v112_v14 }
  0xea   :  { %123 = vadd.xlane.f32.xlu0 %v122_v17 }
  0xeb   :  { %v125_v19 = vsel %vm121_vm2, %v120_v18, 0.0 }
  0xee   :  { %126 = vadd.xlane.f32.xlu0 %v125_v19 }
 0x177   :  { %v124_v20 = vpop.xlane.xlu0 %123 }
 0x178   :  { %v129_v21 = vmul.f32 0.03125, %v124_v20 }
 0x17a   :  { %v131_v22 = vsub.f32 %v119_v16, %v129_v21 }
 0x17b   :  { %v127_v23 = vpop.xlane.xlu0 %126 }
 0x17c   :  { %v130_v24 = vmul.f32 0.03125, %v127_v23  ;;  %v133_v25 = vmul.f32 %v131_v22, %v131_v22 }
 0x17e   :  { %v132_v26 = vsub.f32 %v120_v18, %v130_v24  ;;  %v135_v27 = vsel %vm121_vm2, %v133_v25, 0.0 }
 0x17f   :  { %136 = vadd.xlane.f32.xlu1 %v135_v27 }
 0x180   :  { %v134_v28 = vmul.f32 %v132_v26, %v132_v26 }
 0x182   :  { %v138_v29 = vsel %vm121_vm2, %v134_v28, 0.0 }
 0x183   :  { %139 = vadd.xlane.f32.xlu1 %v138_v29 }
 0x20c   :  { %v137_v30 = vpop.xlane.xlu1 %136 }
 0x20d   :  { %v141_v31 = vmul.f32 0.03125, %v137_v30 }
 0x20f   :  { %v143_v32 = vadd.f32 1e-12, %v141_v31 }
 0x210   :  { %v140_v33 = vpop.xlane.xlu1 %139 }
 0x211   :  { %223 = vrsqrt.f32 %v143_v32  ;;  %v142_v34 = vmul.f32 0.03125, %v140_v33 }
 0x213   :  { %v144_v35 = vadd.f32 1e-12, %v142_v34 }
 0x215   :  { %225 = vrsqrt.f32 %v144_v35 }
 0x21b   :  { %v224_v36 = vpop.eup %223 }
 0x21c   :  { %v147_v38 = vmul.f32 %v224_v36, %v131_v22 }
 0x21e   :  { %v156_v40 = vmul.f32 %v189_v37, %v147_v38 }
 0x21f   :  { %v226_v41 = vpop.eup %225 }
 0x220   :  { %v165_v42 = vadd.f32 %v190_v39, %v156_v40  ;;  %v148_v43 = vmul.f32 %v226_v41, %v132_v26 }
 0x222   :  { %v193_v44 = vpack.c.bf16 %v165_v42, %v165_v42  ;;  %v157_v45 = vmul.f32 %v189_v37, %v148_v43 }
 0x224   :  { %176 = vst.msk [vmem:[%s307_s6] sm:$0xf] %vm175_vm3, %v193_v44  ;;  %v166_v46 = vadd.f32 %v190_v39, %v157_v45 }
 0x226   :  { %v194_v47 = vpack.c.bf16 %v166_v46, %v166_v46 }
 0x228   :  { %177 = vst.msk [vmem:[%s307_s6 + $0x4] sm:$0xf] %vm175_vm3, %v194_v47 }

// kernel: _lambda_.26
= control target key start
LH: loop header
LB: loop body
LE: loop exit
PB: predicated region body
PF: predicated region fallthrough
CT: control target
= control target key end

     0   :  { %v116_v0 = vmov 0.0   ;;  %vm117_vm0 = vmmov 0   ;;  %vm39_vm1 = vcmask 261120   ;;  %vm89_vm2 = vcmask 519168   ;;  %s153_s1 = inlined_call_operand.vmem [shape: bf16[32,64], index: 1, kind: input, shape index: {}]   ;;  %s154_s0 = inlined_call_operand.vmem [shape: bf16[8,32], index: 0, kind: input, shape index: {}]   ;;  %s155_s2 = inlined_call_operand.vmem [shape: f32[1,64], index: 2, kind: input, shape index: {}]   ;;  %s156_s3 = inlined_call_operand.vmem [shape: bf16[8,64], index: 3, kind: output, shape index: {}]  }
   0x1   :  { %102 = vmatprep.subr.bf16.mxu0 %v116_v0  ;;  %v112_v1 = vld [vmem:[%s153_s1] sm:$0xff]   ;;  %106 = vmatprep.mubr.msk.bf16.mxu0 %vm117_vm0, %v116_v0  ;;  %v113_v2 = vld [vmem:[%s153_s1 + $0x8] sm:$0xff]  }
   0x2   :  { %103 = vmatpush3.bf16.msra.mxu0 %v112_v1  ;;  %v15_v3 = vld [vmem:[%s154_s0] sm:$0xf] }
   0x3   :  { %104 = vmatprep.subr.bf16.mxu0 %v116_v0  ;;  %v95_v4 = vld [vmem:[%s155_s2] ss:$0 sm:$0xff] }
   0x6   :  { %105 = vmatpush3.bf16.msra.mxu0 %v113_v2 }
   0x9   :  { %107 = vmatmul.mubr.msk.bf16.vlgmr.msra.gmra.mrb[0].mxu0 %vm39_vm1, %v15_v3 }
  0xdc   :  { %v77_v5 = vpop.f32.mrb[0].mxu0 }
  0xdd   :  { %v78_v6 = vadd.f32 %v95_v4, %v77_v5  ;;  %v108_v7 = vpop.f32.mrb[1].mxu0 }
  0xde   :  { %v80_v8 = vpop.f32.mrb[2].mxu0 }
  0xdf   :  { %v84_v9 = vmul.f32 0.70710677, %v78_v6  ;;  %v109_v10 = vpop.f32.mrb[3].mxu0  ;;  %v83_v12 = vmul.f32 0.5, %v78_v6 }
  0xe1   :  { %114 = verf.f32 %v84_v9 }
  0xeb   :  { %v115_v11 = vpop.eup %114 }
  0xec   :  { %v86_v13 = vadd.f32 1.0, %v115_v11 }
  0xee   :  { %v87_v14 = vmul.f32 %v86_v13, %v83_v12 }
  0xf0   :  { %v88_v15 = vpack.c.bf16 %v87_v14, %v87_v14 }
  0xf2   :  { %90 = vst.msk [vmem:[%s156_s3] sm:$0xf] %vm89_vm2, %v88_v15 }

// kernel: _lambda_.27
= control target key start
LH: loop header
LB: loop body
LE: loop exit
PB: predicated region body
PF: predicated region fallthrough
CT: control target
= control target key end

     0   :  { %v135_v0 = vmov 0.0   ;;  %vm136_vm0 = vmmov 0   ;;  %vm55_vm1 = vcmask 523264   ;;  %vm100_vm2 = vcmask 257024   ;;  %s178_s1 = inlined_call_operand.vmem [shape: bf16[64,32], index: 1, kind: input, shape index: {}]   ;;  %s179_s0 = inlined_call_operand.vmem [shape: bf16[8,64], index: 0, kind: input, shape index: {}]   ;;  %s180_s2 = inlined_call_operand.vmem [shape: f32[1,32], index: 2, kind: input, shape index: {}]   ;;  %s181_s3 = inlined_call_operand.vmem [shape: bf16[8,32], index: 3, kind: output, shape index: {}]  }
   0x1   :  { %117 = vmatprep.subr.bf16.mxu0 %v135_v0  ;;  %v131_v1 = vld [vmem:[%s178_s1] sm:$0xff]   ;;  %125 = vmatprep.mubr.msk.bf16.mxu0 %vm136_vm0, %v135_v0  ;;  %v132_v2 = vld [vmem:[%s178_s1 + $0x8] sm:$0xff]   ;;  %v133_v3 = vld [vmem:[%s178_s1 + $0x10] sm:$0xff]  }
   0x2   :  { %118 = vmatpush3.bf16.msra.mxu0 %v131_v1  ;;  %v134_v4 = vld [vmem:[%s178_s1 + $0x18] sm:$0xff]   ;;  %v15_v5 = vld [vmem:[%s179_s0] sm:$0xf] }
   0x3   :  { %119 = vmatprep.subr.bf16.mxu0 %v135_v0  ;;  %v106_v6 = vld [vmem:[%s180_s2] ss:$0 sm:$0xff] }
   0x6   :  { %120 = vmatpush3.bf16.msra.mxu0 %v132_v2 }
   0x7   :  { %121 = vmatprep.subr.bf16.mxu0 %v135_v0 }
   0xa   :  { %122 = vmatpush3.bf16.msra.mxu0 %v133_v3 }
   0xb   :  { %123 = vmatprep.subr.bf16.mxu0 %v135_v0 }
   0xe   :  { %124 = vmatpush3.bf16.msra.mxu0 %v134_v4 }
  0x11   :  { %126 = vmatmul.mubr.msk.bf16.vlgmr.msra.gmra.mrb[0].mxu0 %vm55_vm1, %v15_v5 }
  0xe4   :  { %v93_v7 = vpop.f32.mrb[0].mxu0 }
  0xe5   :  { %v94_v8 = vadd.f32 %v106_v6, %v93_v7  ;;  %v127_v9 = vpop.f32.mrb[1].mxu0 }
  0xe6   :  { %v96_v10 = vpop.f32.mrb[2].mxu0 }
  0xe7   :  { %v99_v11 = vpack.c.bf16 %v94_v8, %v94_v8  ;;  %v128_v12 = vpop.f32.mrb[3].mxu0 }
  0xe9   :  { %101 = vst.msk [vmem:[%s181_s3] sm:$0xf] %vm100_vm2, %v99_v11 }

// kernel: _lambda_.25
= control target key start
LH: loop header
LB: loop body
LE: loop exit
PB: predicated region body
PF: predicated region fallthrough
CT: control target
= control target key end

     0   :  { %v109_v0 = vmov 0.0   ;;  %vm110_vm0 = vmmov 0   ;;  %vm39_vm1 = vcmask 261120   ;;  %vm84_vm2 = vcmask 257024   ;;  %s146_s1 = inlined_call_operand.vmem [shape: bf16[32,32], index: 1, kind: input, shape index: {}]   ;;  %s147_s0 = inlined_call_operand.vmem [shape: bf16[8,32], index: 0, kind: input, shape index: {}]   ;;  %s148_s2 = inlined_call_operand.vmem [shape: f32[1,32], index: 2, kind: input, shape index: {}]   ;;  %s149_s3 = inlined_call_operand.vmem [shape: bf16[8,32], index: 3, kind: output, shape index: {}]  }
   0x1   :  { %97 = vmatprep.subr.bf16.mxu0 %v109_v0  ;;  %v107_v1 = vld [vmem:[%s146_s1] sm:$0xff]   ;;  %101 = vmatprep.mubr.msk.bf16.mxu0 %vm110_vm0, %v109_v0  ;;  %v108_v2 = vld [vmem:[%s146_s1 + $0x8] sm:$0xff]  }
   0x2   :  { %98 = vmatpush3.bf16.msra.mxu0 %v107_v1  ;;  %v15_v3 = vld [vmem:[%s147_s0] sm:$0xf] }
   0x3   :  { %99 = vmatprep.subr.bf16.mxu0 %v109_v0  ;;  %v90_v4 = vld [vmem:[%s148_s2] ss:$0 sm:$0xff] }
   0x6   :  { %100 = vmatpush3.bf16.msra.mxu0 %v108_v2 }
   0x9   :  { %102 = vmatmul.mubr.msk.bf16.vlgmr.msra.gmra.mrb[0].mxu0 %vm39_vm1, %v15_v3 }
  0xdc   :  { %v77_v5 = vpop.f32.mrb[0].mxu0 }
  0xdd   :  { %v78_v6 = vadd.f32 %v90_v4, %v77_v5  ;;  %v103_v7 = vpop.f32.mrb[1].mxu0 }
  0xde   :  { %v80_v8 = vpop.f32.mrb[2].mxu0 }
  0xdf   :  { %v83_v9 = vpack.c.bf16 %v78_v6, %v78_v6  ;;  %v104_v10 = vpop.f32.mrb[3].mxu0 }
  0xe1   :  { %85 = vst.msk [vmem:[%s149_s3] sm:$0xf] %vm84_vm2, %v83_v9 }

// kernel: _lambda_.24
= control target key start
LH: loop header
LB: loop body
LE: loop exit
PB: predicated region body
PF: predicated region fallthrough
CT: control target
= control target key end

     0   :  { %s1167_s30 = smov 0   ;;  %s1169_s10 = smov 0   ;;  %s1252_s0 = inlined_call_operand.vmem [shape: bf16[2,4,32], index: 0, kind: input, shape index: {}]   ;;  %s1253_s1 = inlined_call_operand.vmem [shape: bf16[2,8,32], index: 1, kind: input, shape index: {}]   ;;  %s1254_s2 = inlined_call_operand.vmem [shape: bf16[1,32,32], index: 2, kind: input, shape index: {}]   ;;  %s1255_s3 = inlined_call_operand.vmem [shape: bf16[1,32,32], index: 3, kind: input, shape index: {}]   ;;  %s1256_s4 = inlined_call_operand.vmem [shape: bf16[1,32,32], index: 4, kind: input, shape index: {}]   ;;  %s1257_s5 = inlined_call_operand.vmem [shape: f32[1,1,32], index: 5, kind: input, shape index: {}, may-alias: {5,6,7}]   ;;  %s1258_s6 = inlined_call_operand.vmem [shape: f32[1,1,32], index: 6, kind: input, shape index: {}, may-alias: {5,6,7}]   ;;  %s1259_s7 = inlined_call_operand.vmem [shape: f32[1,1,32], index: 7, kind: input, shape index: {}, may-alias: {5,6,7}]   ;;  %s1260_s8 = inlined_call_operand.vmem [shape: f32[2,1,8], index: 8, kind: input, shape index: {}]   ;;  %s1261_s9 = inlined_call_operand.vmem [shape: bf16[2,1,4,32], index: 9, kind: output, shape index: {}]  }
   0x1   :  { %s1171_s11 = smov 0  }
   0x2 LB: > { %s31_s12 = sadd.s32 1, %s1109_s10  ;;  %p985_p0 = scmp.ge.s32.totalorder %s1113_s11, 1  ;;  %s1113_s11 = sphi %s1171_s11, %s19_s11   ;;  %s1109_s10 = sphi %s1169_s10, %s1263_s10   ;;  %s1105_s30 = sphi %s1167_s30, %s1262_s30  }
   0x3   : > { %p33_p1 = scmp.ge.s32.totalorder %s31_s12, 2  ;;  %p371_p2 = scmp.lt.s32.totalorder %s1113_s11, 3 }
   0x5   : > { %s1265_s12 = smov (%p33_p1, %s31_s12), 0  ;;  %p372_p3 = pnand %p985_p0, %p371_p2 }
   0x6   : > { %v1081_v0 = vld [vmem:[%s1255_s3] sm:$0xff] (!%p372_p3)   ;;  %v1115_v1 = vmov (!%p372_p3), 0.0   ;;  %v1083_v3 = vld [vmem:[%s1255_s3 + $0x8] sm:$0xff] (!%p372_p3)   ;;  %vm1116_vm0 = vmmov (!%p372_p3), 0   ;;  %p439_p4 = scmp.lt.s32.totalorder (!%p372_p3), %s1105_s30, 1  ;;  %vm518_vm1 = vcmask (!%p372_p3), 261120  }
   0x7   : > { %375 = sbr.rel (%p372_p3) target bundleno = 987 (0x3db), region = 56  ;;  %1027 = vmatprep.subr.bf16.mxu1 (!%p372_p3), %v1115_v1  ;;  %1019 = vmatprep.subr.bf16.mxu0 (!%p372_p3), %v1115_v1  ;;  %v1082_v2 = vld [vmem:[%s1254_s2] sm:$0xff] (!%p372_p3)   ;;  %v1084_v4 = vld [vmem:[%s1254_s2 + $0x8] sm:$0xff] (!%p372_p3)   ;;  %vm736_vm2 = vcmask (!%p372_p3), 60416   ;;  %vm754_vm3 = vcmask (!%p372_p3), 1043456   ;;  %vm750_vm4 = vcmask (!%p372_p3), 64512  }
   0x8   : > { %1028 = vmatpush3.bf16.msra.mxu1 (!%p372_p3), %v1081_v0  ;;  %1031 = vmatprep.mubr.msk.bf16.mxu1 (!%p372_p3), %vm1116_vm0, %v1115_v1  ;;  %v993_v7 = vld [vmem:[%s1258_s6] ss:$0 sm:$0xff] (!%p372_p3)  ;;  %v1086_v24 = vld [vmem:[%s1256_s4 + $0x8] sm:$0xff] (!%p372_p3)   ;;  %vm799_vm5 = vcmask (!%p372_p3), 254976  }
   0x9   : > { %1029 = vmatprep.subr.bf16.mxu1 (!%p372_p3), %v1115_v1  ;;  %1020 = vmatpush3.bf16.msra.mxu0 (!%p372_p3), %v1082_v2  ;;  %v989_v8 = vld [vmem:[%s1257_s5] ss:$0 sm:$0xff] (!%p372_p3) }
   0xa   : > { %1021 = vmatprep.subr.bf16.mxu0 (!%p372_p3), %v1115_v1  ;;  %1023 = vmatprep.mubr.msk.bf16.mxu0 (!%p372_p3), %vm1116_vm0, %v1115_v1  ;;  %v1085_v23 = vld [vmem:[%s1256_s4] sm:$0xff] (!%p372_p3)  }
   0xb   : > { %v997_v40 = vld [vmem:[%s1259_s7] ss:$0 sm:$0xff] (!%p372_p3) }
   0xc   : > { %1030 = vmatpush3.bf16.msra.mxu1 (!%p372_p3), %v1083_v3 }
   0xd   : > { %1022 = vmatpush3.bf16.msra.mxu0 (!%p372_p3), %v1084_v4  ;;  %1043 = vmatprep.subr.bf16.mxu1 (!%p372_p3), %v1115_v1 }
   0xe   : > { %s1267_s30 = smov (!%p439_p4, %s1105_s30), 1  ;;  %1035 = vmatprep.subr.bf16.mxu0 %v1115_v1 }
   0xf   : > { %s987_s21 = sshll.u32 %s1267_s30, 2  ;;  %s986_s22 = sshll.u32 %s1267_s30, 1 }
  0x10   : > { %s446_s25 = scalar_lea.vmem %s1253_s1, %s987_s21  ;;  %s442_s28 = scalar_lea.vmem %s1252_s0, %s986_s22 }
  0x11   : > { %v483_v5 = vld [vmem:[%s446_s25] sm:$0xf]  ;;  %s473_s23 = scalar_lea.vmem %s1260_s8, %s1267_s30 }
  0x12   : > { %v482_v6 = vld [vmem:[%s442_s28] sm:$0x3]  ;;  %1032 = vmatmul.mubr.msk.bf16.vlgmr.msra.gmra.mrb[0].mxu1 %vm518_vm1, %v483_v5  ;;  %s480_s28 = scalar_lea.vmem %s1261_s9, %s986_s22 }
  0x13   : > { %1024 = vmatmul.mubr.msk.bf16.vlgmr.msra.gmra.mrb[0].mxu0 %vm518_vm1, %v482_v6  ;;  %1045 = vmatprep.mubr.msk.bf16.mxu1 %vm1116_vm0, %v1115_v1  ;;  %v1001_v25 = vld [vmem:[%s473_s23] ss:$0 sm:$0xff] }
  0x14   : > { %1039 = vmatprep.mubr.msk.bf16.mxu0 %vm1116_vm0, %v1115_v1  ;;  %1036 = vmatpush3.bf16.msra.mxu0 %v1085_v23 }
  0x15   : > { %1037 = vmatprep.subr.bf16.mxu0 %v1115_v1 }
  0x18   : > { %1038 = vmatpush3.bf16.msra.mxu0 %v1086_v24 }
  0x19   : > { %1049 = vmatprep.subr.bf16.mxu0 %v1115_v1 }
  0x1b   : > { %1040 = vmatmul.mubr.msk.bf16.vlgmr.msra.gmra.mrb[4].mxu0 %vm518_vm1, %v483_v5 }
  0x1c   : > { %1051 = vmatprep.mubr.msk.bf16.mxu0 %vm1116_vm0, %v1115_v1 }
  0xe5   : > { %v618_v9 = vpop.f32.mrb[0].mxu1 }
  0xe6   : > { %v619_v10 = vadd.f32 %v993_v7, %v618_v9  ;;  %v1033_v11 = vpop.f32.mrb[1].mxu1  ;;  %v556_v12 = vpop.f32.mrb[0].mxu0 }
  0xe7   : > { %v621_v13 = vpop.f32.mrb[2].mxu1  ;;  %v557_v14 = vadd.f32 %v989_v8, %v556_v12  ;;  %v1025_v15 = vpop.f32.mrb[1].mxu0 }
  0xe8   : > { %v683_v16 = vpack.c.bf16 %v619_v10, %v619_v10  ;;  %v1034_v17 = vpop.f32.mrb[3].mxu1  ;;  %v559_v18 = vpop.f32.mrb[2].mxu0 }
  0xe9   : > { %v1026_v19 = vpop.f32.mrb[3].mxu0  ;;  %v562_v21 = vmul.f32 0.17677669, %v557_v14 }
  0xea   : > { %v694_v20 = vsel %vm518_vm1, %v683_v16, 0 }
  0xeb   : > { %1044 = vmatpush3.bf16.xpose.msra.mxu1 %v694_v20  ;;  %v682_v22 = vpack.c.bf16 %v562_v21, %v562_v21 }
  0xee   : > { %v676_v37 = vpop.f32.mrb[4].mxu0 }
  0xef   : > { %v1041_v38 = vpop.f32.mrb[5].mxu0  ;;  %v677_v42 = vadd.f32 %v997_v40, %v676_v37 }
  0xf0   : > { %v679_v39 = vpop.f32.mrb[6].mxu0 }
  0xf1   : > { %v1042_v41 = vpop.f32.mrb[7].mxu0  ;;  %v749_v43 = vpack.c.bf16 %v677_v42, %v677_v42 }
  0xf2   : > { %1046 = vmatmul.mubr.msk.bf16.vlgmr.msra.gmra.mrb[4].mxu1 %vm518_vm1, %v682_v22 }
  0xf3   : > { %v756_v44 = vsel %vm754_vm3, %v749_v43, 0 }
  0xf4   : > { %1050 = vmatpush3.bf16.msra.mxu0 %v756_v44 }
 0x1c5   : > { %v730_v26 = vpop.f32.mrb[4].mxu1 }
 0x1c6   : > { %v731_v27 = vadd.f32 %v1001_v25, %v730_v26  ;;  %v1047_v28 = vpop.f32.mrb[5].mxu1 }
 0x1c7   : > { %v733_v29 = vpop.f32.mrb[6].mxu1 }
 0x1c8   : > { %v1048_v30 = vpop.f32.mrb[7].mxu1  ;;  %v737_v31 = vsel %vm736_vm2, %v731_v27, -inf }
 0x1c9   : > { %738 = vmax.xlane.f32.xlu0 %v737_v31 }
 0x256   : > { %v739_v32 = vpop.xlane.xlu0 %738 }
 0x257   : > { %v740_v33 = vsub.f32 %v731_v27, %v739_v32 }
 0x259   : > { %v741_v34 = vmul.f32 1.442695, %v740_v33 }
 0x25b   : > { %1087 = vpow2.f32 %v741_v34 }
 0x265   : > { %v1088_v35 = vpop.eup %1087 }
 0x266   : > { %v743_v36 = vsel %vm736_vm2, %v1088_v35, 0.0 }
 0x267   : > { %744 = vadd.xlane.f32.xlu0 %v743_v36 }
 0x2f4   : > { %v745_v45 = vpop.xlane.xlu0 %744 }
 0x2f5   : > { %1089 = vrcp.f32 %v745_v45 }
 0x2ff   : > { %v1090_v46 = vpop.eup %1089 }
 0x300   : > { %v747_v47 = vmul.f32 %v1090_v46, %v1088_v35 }
 0x302   : > { %v748_v48 = vpack.c.bf16 %v747_v47, %v747_v47 }
 0x304   : > { %1052 = vmatmul.mubr.msk.bf16.vlgmr.msra.gmra.mrb[8].mxu0 %vm750_vm4, %v748_v48 }
 0x3d7   : > { %v792_v49 = vpop.f32.mrb[8].mxu0 }
 0x3d8   : > { %v798_v50 = vpack.c.bf16 %v792_v49, %v792_v49  ;;  %v1053_v51 = vpop.f32.mrb[9].mxu0 }
 0x3d9   : > { %v795_v52 = vpop.f32.mrb[10].mxu0 }
 0x3da   : > { %800 = vst.msk [vmem:[%s480_s28] sm:$0x3] %vm799_vm5, %v798_v50  ;;  %v1054_v53 = vpop.f32.mrb[11].mxu0 }
 0x3db PF: > { %s19_s11 = sadd.s32 1, %s1113_s11   ;;  %s1262_s30 = smov %s1109_s10 }
 0x3dc   : > { %p16_p5 = scmp.ge.s32.totalorder %s19_s11, 4   ;;  %s1263_s10 = smov %s1265_s12 }
 0x3de   :  { %18 = sbr.rel (!%p16_p5) target bundleno = 2 (0x2), region = 110 }

// kernel: _lambda_.30
= control target key start
LH: loop header
LB: loop body
LE: loop exit
PB: predicated region body
PF: predicated region fallthrough
CT: control target
= control target key end

     0   :  { %s1195_s30 = smov 0   ;;  %s1197_s10 = smov 0   ;;  %s1314_s0 = inlined_call_operand.vmem [shape: bf16[2,8,32], index: 0, kind: input, shape index: {}]   ;;  %s1315_s1 = inlined_call_operand.vmem [shape: bf16[2,4,32], index: 1, kind: input, shape index: {}]   ;;  %s1316_s2 = inlined_call_operand.vmem [shape: bf16[2,32,16], index: 2, kind: input, shape index: {}]   ;;  %s1317_s3 = inlined_call_operand.vmem [shape: bf16[2,32,16], index: 3, kind: input, shape index: {}]   ;;  %s1318_s4 = inlined_call_operand.vmem [shape: bf16[2,32,16], index: 4, kind: input, shape index: {}]   ;;  %s1319_s5 = inlined_call_operand.vmem [shape: f32[2,1,16], index: 5, kind: input, shape index: {}, may-alias: {5,6,7}]   ;;  %s1320_s6 = inlined_call_operand.vmem [shape: f32[2,1,16], index: 6, kind: input, shape index: {}, may-alias: {5,6,7}]   ;;  %s1321_s7 = inlined_call_operand.vmem [shape: f32[2,1,16], index: 7, kind: input, shape index: {}, may-alias: {5,6,7}]   ;;  %s1322_s8 = inlined_call_operand.vmem [shape: f32[2,1,4], index: 8, kind: input, shape index: {}]   ;;  %s1323_s9 = inlined_call_operand.vmem [shape: bf16[2,2,8,16], index: 9, kind: output, shape index: {}]  }
   0x1   :  { %s1199_s11 = smov 0   ;;  %s1201_s12 = smov 0  }
   0x2   :  { %s1203_s13 = smov 0  }
   0x3 LB: > { %s28_s14 = sadd.s32 1, %s1133_s11  ;;  %s31_s15 = sadd.s32 1, %s1137_s12  ;;  %s1141_s13 = sphi %s1203_s13, %s19_s13   ;;  %s1137_s12 = sphi %s1201_s12, %s1327_s12   ;;  %s1133_s11 = sphi %s1199_s11, %s1326_s11   ;;  %s1129_s10 = sphi %s1197_s10, %s1325_s10   ;;  %s1125_s30 = sphi %s1195_s30, %s1324_s30  }
   0x4   : > { %p29_p0 = scmp.ge.s32.totalorder %s28_s14, 2  ;;  %p971_p1 = scmp.ge.s32.totalorder %s1141_s13, 1 }
   0x5   : > { %p371_p2 = scmp.lt.s32.totalorder %s1141_s13, 5 }
   0x6   : > { %s1329_s14 = smov (%p29_p0, %s28_s14), 0  ;;  %s1331_s15 = smov (!%p29_p0, %s31_s15), %s1137_s12 }
   0x7   : > { %p372_p3 = pnand %p971_p1, %p371_p2  ;;  %p33_p4 = scmp.ge.s32.totalorder %s1331_s15, 2 }
   0x8   : > { %p448_p5 = scmp.lt.s32.totalorder (!%p372_p3), %s1125_s30, 1  ;;  %p440_p6 = scmp.lt.s32.totalorder (!%p372_p3), %s1129_s10, 1  ;;  %v1143_v0 = vmov (!%p372_p3), 0.0   ;;  %vm1144_vm0 = vmmov (!%p372_p3), 0   ;;  %vm520_vm1 = vcmask (!%p372_p3), 261120   ;;  %vm692_vm2 = vcmask (!%p372_p3), 130048  }
   0x9   : > { %s1333_s15 = smov (%p33_p4, %s1331_s15), 0  ;;  %375 = sbr.rel (%p372_p3) target bundleno = 996 (0x3e4), region = 56 }
   0xa   : > { %1023 = vmatprep.subr.bf16.mxu1 (!%p372_p3), %v1143_v0  ;;  %1015 = vmatprep.subr.bf16.mxu0 (!%p372_p3), %v1143_v0  ;;  %vm739_vm3 = vcmask (!%p372_p3), 31744   ;;  %vm756_vm4 = vcmask (!%p372_p3), 1041408   ;;  %vm801_vm5 = vcmask (!%p372_p3), 125952  }
   0xb   : > { %1027 = vmatprep.mubr.msk.bf16.mxu1 (!%p372_p3), %vm1144_vm0, %v1143_v0  ;;  %1019 = vmatprep.mubr.msk.bf16.mxu0 (!%p372_p3), %vm1144_vm0, %v1143_v0 }
  0x10   : > { %s1335_s30 = smov (!%p448_p5, %s1125_s30), 1  ;;  %s1337_s10 = smov (!%p440_p6, %s1129_s10), 1 }
  0x11   : > { %s999_s16 = sshll.u32 %s1335_s30, 4  ;;  %s973_s23 = sshll.u32 %s1337_s10, 1 }
  0x12   : > { %s457_s19 = scalar_lea.vmem %s1317_s3, %s999_s16  ;;  %s452_s22 = scalar_lea.vmem %s1316_s2, %s999_s16 }
  0x13   : > { %v1093_v1 = vld [vmem:[%s457_s19] sm:$0xff]   ;;  %v1095_v3 = vld [vmem:[%s457_s19 + $0x8] sm:$0xff]   ;;  %s1246_s26 = scalar_lea.vmem %s1318_s4, %s999_s16  ;;  %s447_s29 = scalar_lea.vmem %s1315_s1, %s973_s23 }
  0x14   : > { %v1094_v2 = vld [vmem:[%s452_s22] sm:$0xff]   ;;  %1024 = vmatpush3.bf16.msra.mxu1 %v1093_v1  ;;  %v1096_v4 = vld [vmem:[%s452_s22 + $0x8] sm:$0xff]   ;;  %s972_s17 = sshll.u32 %s1337_s10, 2  ;;  %s468_s22 = scalar_lea.vmem %s1320_s6, %s1335_s30 }
  0x15   : > { %1025 = vmatprep.subr.bf16.mxu1 %v1143_v0  ;;  %1016 = vmatpush3.bf16.msra.mxu0 %v1094_v2  ;;  %s443_s20 = scalar_lea.vmem %s1314_s0, %s972_s17  ;;  %v485_v5 = vld [vmem:[%s447_s29] sm:$0x3]  ;;  %s465_s27 = scalar_lea.vmem %s1319_s5, %s1335_s30  ;;  %v1098_v24 = vld [vmem:[%s1246_s26 + $0x8] sm:$0xff]  }
  0x16   : > { %1017 = vmatprep.subr.bf16.mxu0 %v1143_v0  ;;  %v484_v6 = vld [vmem:[%s443_s20] sm:$0xf]  ;;  %s474_s17 = scalar_lea.vmem %s1322_s8, %s1337_s10  ;;  %s471_s19 = scalar_lea.vmem %s1321_s7, %s1335_s30 }
  0x17   : > { %v986_v7 = vld [vmem:[%s468_s22] ss:$0 sm:$0xff]  ;;  %s480_s20 = sadd.s32 %s973_s23, %s1335_s30 }
  0x18   : > { %1026 = vmatpush3.bf16.msra.mxu1 %v1095_v3  ;;  %v982_v8 = vld [vmem:[%s465_s27] ss:$0 sm:$0xff]  ;;  %s981_s16 = sshll.u32 %s480_s20, 2 }
  0x19   : > { %1018 = vmatpush3.bf16.msra.mxu0 %v1096_v4  ;;  %1039 = vmatprep.subr.bf16.mxu1 %v1143_v0  ;;  %v1097_v23 = vld [vmem:[%s1246_s26] sm:$0xff]   ;;  %s482_s24 = scalar_lea.vmem %s1323_s9, %s981_s16 }
  0x1a   : > { %1031 = vmatprep.subr.bf16.mxu0 %v1143_v0  ;;  %v994_v25 = vld [vmem:[%s474_s17] ss:$0 sm:$0xff] }
  0x1b   : > { %1028 = vmatmul.mubr.msk.bf16.vlgmr.msra.gmra.mrb[0].mxu1 %vm520_vm1, %v485_v5  ;;  %v990_v40 = vld [vmem:[%s471_s19] ss:$0 sm:$0xff] }
  0x1c   : > { %1020 = vmatmul.mubr.msk.bf16.vlgmr.msra.gmra.mrb[0].mxu0 %vm520_vm1, %v484_v6  ;;  %1041 = vmatprep.mubr.msk.bf16.mxu1 %vm1144_vm0, %v1143_v0 }
  0x1d   : > { %1035 = vmatprep.mubr.msk.bf16.mxu0 %vm1144_vm0, %v1143_v0  ;;  %1032 = vmatpush3.bf16.msra.mxu0 %v1097_v23 }
  0x1e   : > { %1033 = vmatprep.subr.bf16.mxu0 %v1143_v0 }
  0x21   : > { %1034 = vmatpush3.bf16.msra.mxu0 %v1098_v24 }
  0x22   : > { %1045 = vmatprep.subr.bf16.mxu0 %v1143_v0 }
  0x24   : > { %1036 = vmatmul.mubr.msk.bf16.vlgmr.msra.gmra.mrb[4].mxu0 %vm520_vm1, %v485_v5 }
  0x25   : > { %1047 = vmatprep.mubr.msk.bf16.mxu0 %vm1144_vm0, %v1143_v0 }
  0xee   : > { %v620_v9 = vpop.f32.mrb[0].mxu1 }
  0xef   : > { %v621_v10 = vadd.f32 %v986_v7, %v620_v9  ;;  %v1029_v11 = vpop.f32.mrb[1].mxu1  ;;  %v558_v12 = vpop.f32.mrb[0].mxu0 }
  0xf0   : > { %v623_v13 = vpop.f32.mrb[2].mxu1  ;;  %v559_v14 = vadd.f32 %v982_v8, %v558_v12  ;;  %v1021_v15 = vpop.f32.mrb[1].mxu0 }
  0xf1   : > { %v685_v16 = vpack.c.bf16 %v621_v10, %v621_v10  ;;  %v1030_v17 = vpop.f32.mrb[3].mxu1  ;;  %v561_v18 = vpop.f32.mrb[2].mxu0 }
  0xf2   : > { %v1022_v19 = vpop.f32.mrb[3].mxu0  ;;  %v564_v21 = vmul.f32 0.25, %v559_v14 }
  0xf3   : > { %v697_v20 = vsel %vm692_vm2, %v685_v16, 0 }
  0xf4   : > { %1040 = vmatpush3.bf16.xpose.msra.mxu1 %v697_v20  ;;  %v684_v22 = vpack.c.bf16 %v564_v21, %v564_v21 }
  0xf7   : > { %v678_v37 = vpop.f32.mrb[4].mxu0 }
  0xf8   : > { %v1037_v38 = vpop.f32.mrb[5].mxu0  ;;  %v679_v42 = vadd.f32 %v990_v40, %v678_v37 }
  0xf9   : > { %v681_v39 = vpop.f32.mrb[6].mxu0 }
  0xfa   : > { %v1038_v41 = vpop.f32.mrb[7].mxu0  ;;  %v752_v43 = vpack.c.bf16 %v679_v42, %v679_v42 }
  0xfb   : > { %1042 = vmatmul.mubr.msk.bf16.vlgmr.msra.gmra.mrb[4].mxu1 %vm692_vm2, %v684_v22 }
  0xfc   : > { %v758_v44 = vsel %vm756_vm4, %v752_v43, 0 }
  0xfd   : > { %1046 = vmatpush3.bf16.msra.mxu0 %v758_v44 }
 0x1ce   : > { %v733_v26 = vpop.f32.mrb[4].mxu1 }
 0x1cf   : > { %v734_v27 = vadd.f32 %v994_v25, %v733_v26  ;;  %v1043_v28 = vpop.f32.mrb[5].mxu1 }
 0x1d0   : > { %v736_v29 = vpop.f32.mrb[6].mxu1 }
 0x1d1   : > { %v1044_v30 = vpop.f32.mrb[7].mxu1  ;;  %v740_v31 = vsel %vm739_vm3, %v734_v27, -inf }
 0x1d2   : > { %741 = vmax.xlane.f32.xlu0 %v740_v31 }
 0x25f   : > { %v742_v32 = vpop.xlane.xlu0 %741 }
 0x260   : > { %v743_v33 = vsub.f32 %v734_v27, %v742_v32 }
 0x262   : > { %v744_v34 = vmul.f32 1.442695, %v743_v33 }
 0x264   : > { %1099 = vpow2.f32 %v744_v34 }
 0x26e   : > { %v1100_v35 = vpop.eup %1099 }
 0x26f   : > { %v746_v36 = vsel %vm739_vm3, %v1100_v35, 0.0 }
 0x270   : > { %747 = vadd.xlane.f32.xlu0 %v746_v36 }
 0x2fd   : > { %v748_v45 = vpop.xlane.xlu0 %747 }
 0x2fe   : > { %1101 = vrcp.f32 %v748_v45 }
 0x308   : > { %v1102_v46 = vpop.eup %1101 }
 0x309   : > { %v750_v47 = vmul.f32 %v1102_v46, %v1100_v35 }
 0x30b   : > { %v751_v48 = vpack.c.bf16 %v750_v47, %v750_v47 }
 0x30d   : > { %1048 = vmatmul.mubr.msk.bf16.vlgmr.msra.gmra.mrb[8].mxu0 %vm739_vm3, %v751_v48 }
 0x3e0   : > { %v794_v49 = vpop.f32.mrb[8].mxu0 }
 0x3e1   : > { %v800_v50 = vpack.c.bf16 %v794_v49, %v794_v49  ;;  %v1049_v51 = vpop.f32.mrb[9].mxu0 }
 0x3e2   : > { %v797_v52 = vpop.f32.mrb[10].mxu0 }
 0x3e3   : > { %802 = vst.msk [vmem:[%s482_s24] sm:$0xf] %vm801_vm5, %v800_v50  ;;  %v1050_v53 = vpop.f32.mrb[11].mxu0 }
 0x3e4 PF: > { %s19_s13 = sadd.s32 1, %s1141_s13   ;;  %s1324_s30 = smov %s1133_s11 }
 0x3e5   : > { %p16_p7 = scmp.ge.s32.totalorder %s19_s13, 6   ;;  %s1325_s10 = smov %s1137_s12 }
 0x3e6   : > { %s1326_s11 = smov %s1329_s14  ;;  %s1327_s12 = smov %s1333_s15 }
 0x3e7   :  { %18 = sbr.rel (!%p16_p7) target bundleno = 3 (0x3), region = 110 }

</bundles_post_ra>
